<compile_context>
chip_gen: v7x
topology: tpu7x:2x2x1
jax: 0.10.0
libtpu: 0.0.40
codegen_flags: <defaults>
</compile_context>

<pallas_src>
import jax
import jax.numpy as jnp
from jax import lax
from jax.experimental import pallas as pl
from jax.experimental.pallas import tpu as pltpu


def _gradcam_cam_kernel(x_ref, w_ref, wa_ref, o_ref, mn_ref, mx_ref):
    """One (sample b, N-tile nt) grid step of fast-pathway GradCAM.

    x_ref  : (1, C_in, TR, 128)  VMEM   input tile (f32, or bf16 on v6e/v7x)
    w_ref  : (B * C_feat,)       SMEM   precomputed GradCAM channel weights (f32)
    wa_ref : (C_feat * C_in,)    SMEM   synthetic target-layer weights (f32)
    o_ref  : (1, 1, NB, 128)     VMEM   per-sample RESIDENT output block
    mn_ref, mx_ref : (1, 1) f32  VMEM   running per-sample min / max scratch
    """
    b = pl.program_id(0)
    nt = pl.program_id(1)
    n_nt = pl.num_programs(1)

    c_in = x_ref.shape[1]
    tr = x_ref.shape[2]                       # rows (sublanes) in this N tile
    c_feat = wa_ref.shape[0] // c_in
    chunk = 8 if tr % 8 == 0 else tr          # sublane chunk kept in vregs
    n_chunks = tr // chunk
    cdt = x_ref.dtype                         # compute dtype of the act path

    @pl.when(nt == 0)
    def _init():
        mn_ref[...] = jnp.full_like(mn_ref, jnp.inf)
        mx_ref[...] = jnp.full_like(mx_ref, -jnp.inf)

    # Hoist the tiny scalar tables out of the element path (loop-invariant).
    w_b = [w_ref[b * c_feat + cf] for cf in range(c_feat)]               # f32
    wa = [[wa_ref[cf * c_in + c].astype(cdt) for c in range(c_in)]
          for cf in range(c_feat)]

    row0 = pl.multiple_of(nt * tr, tr)        # offset of this tile inside o_ref

    def _chunk(ic, carry):
        r = pl.multiple_of(ic * chunk, chunk)
        # Load the C_in x-vregs for this chunk ONCE; all C_feat accumulations
        # run register-resident (chunk = 8 sublanes -> 1 vreg/channel in f32).
        xs = [x_ref[0, c, pl.ds(r, chunk), :] for c in range(c_in)]
        cam = None
        for cf in range(c_feat):
            # Synthetic target-layer activation: ReLU(Wa[cf, :] @ x)  (VPU FMAs).
            act = wa[cf][0] * xs[0]
            for c in range(1, c_in):
                act = act + wa[cf][c] * xs[c]
            act = jnp.maximum(act, 0)
            # Fused weighted accumulate; f32 * bf16 promotes -> cam stays f32.
            cam = w_b[cf] * act if cam is None else cam + w_b[cf] * act
        cam = jnp.maximum(cam, 0.0)           # GradCAM ReLU
        # Running per-sample min / max for the final normalization.
        mn_ref[...] = jnp.minimum(mn_ref[...], jnp.min(cam, keepdims=True))
        mx_ref[...] = jnp.maximum(mx_ref[...], jnp.max(cam, keepdims=True))
        dst = pl.multiple_of(row0 + r, chunk)
        o_ref[0, 0, pl.ds(dst, chunk), :] = cam.astype(o_ref.dtype)
        return carry

    lax.fori_loop(0, n_chunks, _chunk, 0, unroll=True)

    # Last N tile of this sample: min-max normalize the resident output block
    # in place with an EXACT divide (the approx reciprocal previously pushed
    # the normalized max above 1.0) before Pallas writes it back to HBM.
    @pl.when(nt == n_nt - 1)
    def _normalize():
        cmin = mn_ref[...]
        inv = 1.0 / (mx_ref[...] - cmin + 1e-6)
        o_ref[0, 0] = ((o_ref[0, 0] - cmin) * inv).astype(o_ref.dtype)


def _pick_tile_rows(nb, target):
    """Largest multiple-of-8 divisor of nb that is <= target, else the full nb."""
    best = nb
    for t in range(8, min(target, nb) + 1, 8):
        if nb % t == 0:
            best = t
    return best


def _gradcam_fast_pathway(x_bcnl, w_flat, wa_flat, tile_rows):
    """x_bcnl: [B, C_in, NB, 128] -> normalized localisation map [B, 1, NB, 128] f32."""
    B, C_in, NB, NL = x_bcnl.shape
    tile = _pick_tile_rows(NB, tile_rows)
    n_tiles = NB // tile

    # VMEM budget: double-buffered input tile + (two) resident output blocks.
    # TODO(synk): for extreme N where even the 1-channel full-N output block
    #             exceeds VMEM, switch to a two-phase streamed normalize.
    in_block = 2 * C_in * tile * NL * x_bcnl.dtype.itemsize
    out_block = 2 * NB * NL * 4
    vmem_bytes = int(min(64 << 20, max(16 << 20, in_block + out_block + (4 << 20))))

    return pl.pallas_call(
        _gradcam_cam_kernel,
        out_shape=jax.ShapeDtypeStruct((B, 1, NB, NL), jnp.float32),
        grid_spec=pltpu.PrefetchScalarGridSpec(
            num_scalar_prefetch=0,
            grid=(B, n_tiles),
            in_specs=[
                # Input streamed in small N tiles -> auto-pipelined DMA and a
                # small per-step working set (v7x 64 MiB VMEM friendly).
                pl.BlockSpec((1, C_in, tile, NL), lambda b, nt: (b, 0, nt, 0)),
                # Tiny 1-D weight tables in SMEM: scalar reads drive the
                # unrolled VPU FMAs (K=3 contractions stay off the MXU).
                pl.BlockSpec(memory_space=pltpu.MemorySpace.SMEM),
                pl.BlockSpec(memory_space=pltpu.MemorySpace.SMEM),
            ],
            # Output block index ignores the N axis -> stays resident in VMEM
            # across the whole sample and is written back to HBM exactly once,
            # after the in-place normalization on the last N tile.
            out_specs=pl.BlockSpec((1, 1, NB, NL), lambda b, nt: (b, 0, 0, 0)),
            scratch_shapes=[
                pltpu.VMEM((1, 1), jnp.float32),   # running per-sample min
                pltpu.VMEM((1, 1), jnp.float32),   # running per-sample max
            ],
        ),
        compiler_params=pltpu.CompilerParams(
            dimension_semantics=("parallel", "arbitrary"),
            vmem_limit_bytes=vmem_bytes,
        ),
    )(x_bcnl, w_flat, wa_flat)


def _default_compute_dtype():
    """bf16 on v6e/v7x (2x VALU throughput, half the DMA); f32 elsewhere (no bf16 VALU on v5e)."""
    try:
        kind = jax.devices()[0].device_kind.lower()
    except Exception:
        return jnp.float32
    if "v6" in kind or "v7" in kind:
        return jnp.bfloat16
    return jnp.float32


def gradcam_explainer_forward(x, w_act, w_grad, alpha, y=None, *,
                              tile_rows=64, compute_dtype=None):
    """Mirror of GradCamExplainer.forward.

    x : [B, C, T, H, W] float32 video clip (NCTHW, like PyTorch).
    Returns localisation_maps[1] (fast pathway): [B, 1, T, H, W] float32.

    The reference module also builds the slow pathway (x[:, :, ::alpha]) and its
    localisation map, but only index 1 (fast) is returned, so that dead work is
    intentionally not computed.  `alpha` / `y` are kept for interface fidelity.
    """
    del alpha, y
    B, C, T, H, W = x.shape
    N = T * H * W

    # GradCAM channel weights folded out of the kernel (exact for the linear
    # gradient path): weights[b, cf] = mean_N(Wg @ x_b) = Wg @ mean_N(x_b).
    # Elementwise-sum form keeps this exact f32 (no implicit low-precision matmul).
    xmean = jnp.mean(x.reshape(B, C, N).astype(jnp.float32), axis=-1)        # (B, C)
    w_flat = jnp.sum(xmean[:, None, :] * w_grad.astype(jnp.float32)[None, :, :],
                     axis=-1).reshape(-1)                                     # (B*C_feat,)
    wa_flat = w_act.astype(jnp.float32).reshape(-1)                           # (C_feat*C_in,)

    # Lane-dense (sublane, lane) layout: N -> (NB, 128).  Ragged N is edge-
    # padded (replicated values lie inside [min, max], so per-sample
    # normalization statistics are unchanged) and sliced off afterwards.
    x_flat = x.reshape(B, C, N)
    n_pad = (-N) % 128
    if n_pad:
        x_flat = jnp.pad(x_flat, ((0, 0), (0, 0), (0, n_pad)), mode="edge")
    NB = (N + n_pad) // 128

    if compute_dtype is None:
        compute_dtype = _default_compute_dtype()
    x_bcnl = x_flat.reshape(B, C, NB, 128).astype(compute_dtype)

    cam = _gradcam_fast_pathway(x_bcnl, w_flat, wa_flat, tile_rows)           # (B,1,NB,128)
    cam = cam.reshape(B, 1, NB * 128)[:, :, :N].reshape(B, 1, T, H, W)
    return cam


def _reference_forward(x, w_act, w_grad):
    """Pure-JAX f32 reference with the module's GradCAM semantics (elementwise-exact)."""
    B, C, T, H, W = x.shape
    N = T * H * W
    xf = x.reshape(B, 1, C, N).astype(jnp.float32)
    acts = jax.nn.relu(jnp.sum(w_act[None, :, :, None] * xf, axis=2))   # (B, C_feat, N)
    grads = jnp.sum(w_grad[None, :, :, None] * xf, axis=2)              # (B, C_feat, N)
    wts = jnp.mean(grads, axis=-1, keepdims=True)                       # (B, C_feat, 1)
    cam = jax.nn.relu(jnp.sum(wts * acts, axis=1, keepdims=True))       # (B, 1, N)
    cmin = jnp.min(cam, axis=-1, keepdims=True)
    cmax = jnp.max(cam, axis=-1, keepdims=True)
    cam = (cam - cmin) / (cmax - cmin + 1e-6)
    return cam.reshape(B, 1, T, H, W)


if __name__ == "__main__":
    # Small shapes consistent with a SlowFast video input (NCTHW).
    B, C, T, H, W = 2, 3, 8, 16, 16
    ALPHA = 4          # cfg.SLOWFAST.ALPHA (slow pathway is dead work -> unused)
    C_FEAT = 16        # synthetic target-layer channel count

    key = jax.random.PRNGKey(0)
    kx, ka, kg = jax.random.split(key, 3)
    x = jax.random.normal(kx, (B, C, T, H, W), dtype=jnp.float32)
    w_act = jax.random.normal(ka, (C_FEAT, C), dtype=jnp.float32) * 0.1
    w_grad = jax.random.normal(kg, (C_FEAT, C), dtype=jnp.float32) * 0.1

    # tile_rows=8 so even the toy N exercises the tiled "arbitrary" axis, the
    # running min/max and the in-place final normalization (grid = (2, 2)).
    out = gradcam_explainer_forward(x, w_act, w_grad, ALPHA, tile_rows=8)
    out = jax.block_until_ready(out)

    assert out.shape == (B, 1, T, H, W), out.shape
    assert out.dtype == jnp.float32, out.dtype
    mn = float(jnp.min(out))
    mx = float(jnp.max(out))
    assert mn >= -1e-6, mn
    assert mx <= 1.0 + 1e-6, mx            # exact divide -> never exceeds 1

    # Numerical check of the f32 path against a pure-JAX reference.
    out32 = gradcam_explainer_forward(x, w_act, w_grad, ALPHA, tile_rows=8,
                                      compute_dtype=jnp.float32)
    out32 = jax.block_until_ready(out32)
    ref = _reference_forward(x, w_act, w_grad)
    err = float(jnp.max(jnp.abs(out32 - ref)))
    assert err < 1e-3, err

    print("KERNEL_OK")
</pallas_src>

<mosaic_0001>
module attributes {stable_mosaic.version = 11 : i64} {
  func.func @_gradcam_cam_kernel(%arg0: i32, %arg1: i32, %arg2: memref<1x3x8x128xf32, #tpu.memory_space<vmem>>, %arg3: memref<32xf32, #tpu.memory_space<smem>>, %arg4: memref<48xf32, #tpu.memory_space<smem>>, %arg5: memref<1x1x16x128xf32, #tpu.memory_space<vmem>>, %arg6: memref<1x1xf32, #tpu.memory_space<vmem>>, %arg7: memref<1x1xf32, #tpu.memory_space<vmem>>) attributes {dimension_semantics = [#tpu.dimension_semantics<parallel>, #tpu.dimension_semantics<arbitrary>], iteration_bounds = array<i64: 2, 2>, scalar_prefetch = 0 : i64, scratch_operands = 2 : i64, tpu.core_type = #tpu.core_type<tc>, window_params = [{transform_indices = @transform_0, window_bounds = array<i64: 1, 3, 8, 128>}, {transform_indices = @transform_1, window_bounds = array<i64: 32>}, {transform_indices = @transform_2, window_bounds = array<i64: 48>}, {transform_indices = @transform_3, window_bounds = array<i64: 1, 1, 16, 128>}]} {
    %c0_i32 = arith.constant 0 : i32
    %0 = arith.cmpi eq, %arg1, %c0_i32 : i32
    %1 = arith.extui %0 : i1 to i32
    %c0_i32_0 = arith.constant 0 : i32
    %2 = arith.cmpi ne, %1, %c0_i32_0 : i32
    scf.if %2 {
      %cst_61 = arith.constant 0x7F800000 : f32
      %362 = vector.broadcast %cst_61 : f32 to vector<1x1xf32>
      %c0_62 = arith.constant 0 : index
      %c0_63 = arith.constant 0 : index
      %363 = vector.load %arg6[%c0_62, %c0_63] : memref<1x1xf32, #tpu.memory_space<vmem>>, vector<1x1xf32>
      tpu.vector_store %arg6[%c0_62, %c0_63], %362 {strides = array<i32>} : memref<1x1xf32, #tpu.memory_space<vmem>>, vector<1x1xf32>,
      %cst_64 = arith.constant 0xFF800000 : f32
      %364 = vector.broadcast %cst_64 : f32 to vector<1x1xf32>
      %c0_65 = arith.constant 0 : index
      %c0_66 = arith.constant 0 : index
      %365 = vector.load %arg7[%c0_65, %c0_66] : memref<1x1xf32, #tpu.memory_space<vmem>>, vector<1x1xf32>
      tpu.vector_store %arg7[%c0_65, %c0_66], %364 {strides = array<i32>} : memref<1x1xf32, #tpu.memory_space<vmem>>, vector<1x1xf32>,
    } else {
    }
    %c16_i32 = arith.constant 16 : i32
    %3 = arith.muli %arg0, %c16_i32 : i32
    %c0_i32_1 = arith.constant 0 : i32
    %4 = arith.addi %3, %c0_i32_1 : i32
    %5 = arith.index_cast %4 : i32 to index
    %6 = memref.load %arg3[%5] : memref<32xf32, #tpu.memory_space<smem>>
    %c16_i32_2 = arith.constant 16 : i32
    %7 = arith.muli %arg0, %c16_i32_2 : i32
    %c1_i32 = arith.constant 1 : i32
    %8 = arith.addi %7, %c1_i32 : i32
    %9 = arith.index_cast %8 : i32 to index
    %10 = memref.load %arg3[%9] : memref<32xf32, #tpu.memory_space<smem>>
    %c16_i32_3 = arith.constant 16 : i32
    %11 = arith.muli %arg0, %c16_i32_3 : i32
    %c2_i32 = arith.constant 2 : i32
    %12 = arith.addi %11, %c2_i32 : i32
    %13 = arith.index_cast %12 : i32 to index
    %14 = memref.load %arg3[%13] : memref<32xf32, #tpu.memory_space<smem>>
    %c16_i32_4 = arith.constant 16 : i32
    %15 = arith.muli %arg0, %c16_i32_4 : i32
    %c3_i32 = arith.constant 3 : i32
    %16 = arith.addi %15, %c3_i32 : i32
    %17 = arith.index_cast %16 : i32 to index
    %18 = memref.load %arg3[%17] : memref<32xf32, #tpu.memory_space<smem>>
    %c16_i32_5 = arith.constant 16 : i32
    %19 = arith.muli %arg0, %c16_i32_5 : i32
    %c4_i32 = arith.constant 4 : i32
    %20 = arith.addi %19, %c4_i32 : i32
    %21 = arith.index_cast %20 : i32 to index
    %22 = memref.load %arg3[%21] : memref<32xf32, #tpu.memory_space<smem>>
    %c16_i32_6 = arith.constant 16 : i32
    %23 = arith.muli %arg0, %c16_i32_6 : i32
    %c5_i32 = arith.constant 5 : i32
    %24 = arith.addi %23, %c5_i32 : i32
    %25 = arith.index_cast %24 : i32 to index
    %26 = memref.load %arg3[%25] : memref<32xf32, #tpu.memory_space<smem>>
    %c16_i32_7 = arith.constant 16 : i32
    %27 = arith.muli %arg0, %c16_i32_7 : i32
    %c6_i32 = arith.constant 6 : i32
    %28 = arith.addi %27, %c6_i32 : i32
    %29 = arith.index_cast %28 : i32 to index
    %30 = memref.load %arg3[%29] : memref<32xf32, #tpu.memory_space<smem>>
    %c16_i32_8 = arith.constant 16 : i32
    %31 = arith.muli %arg0, %c16_i32_8 : i32
    %c7_i32 = arith.constant 7 : i32
    %32 = arith.addi %31, %c7_i32 : i32
    %33 = arith.index_cast %32 : i32 to index
    %34 = memref.load %arg3[%33] : memref<32xf32, #tpu.memory_space<smem>>
    %c16_i32_9 = arith.constant 16 : i32
    %35 = arith.muli %arg0, %c16_i32_9 : i32
    %c8_i32 = arith.constant 8 : i32
    %36 = arith.addi %35, %c8_i32 : i32
    %37 = arith.index_cast %36 : i32 to index
    %38 = memref.load %arg3[%37] : memref<32xf32, #tpu.memory_space<smem>>
    %c16_i32_10 = arith.constant 16 : i32
    %39 = arith.muli %arg0, %c16_i32_10 : i32
    %c9_i32 = arith.constant 9 : i32
    %40 = arith.addi %39, %c9_i32 : i32
    %41 = arith.index_cast %40 : i32 to index
    %42 = memref.load %arg3[%41] : memref<32xf32, #tpu.memory_space<smem>>
    %c16_i32_11 = arith.constant 16 : i32
    %43 = arith.muli %arg0, %c16_i32_11 : i32
    %c10_i32 = arith.constant 10 : i32
    %44 = arith.addi %43, %c10_i32 : i32
    %45 = arith.index_cast %44 : i32 to index
    %46 = memref.load %arg3[%45] : memref<32xf32, #tpu.memory_space<smem>>
    %c16_i32_12 = arith.constant 16 : i32
    %47 = arith.muli %arg0, %c16_i32_12 : i32
    %c11_i32 = arith.constant 11 : i32
    %48 = arith.addi %47, %c11_i32 : i32
    %49 = arith.index_cast %48 : i32 to index
    %50 = memref.load %arg3[%49] : memref<32xf32, #tpu.memory_space<smem>>
    %c16_i32_13 = arith.constant 16 : i32
    %51 = arith.muli %arg0, %c16_i32_13 : i32
    %c12_i32 = arith.constant 12 : i32
    %52 = arith.addi %51, %c12_i32 : i32
    %53 = arith.index_cast %52 : i32 to index
    %54 = memref.load %arg3[%53] : memref<32xf32, #tpu.memory_space<smem>>
    %c16_i32_14 = arith.constant 16 : i32
    %55 = arith.muli %arg0, %c16_i32_14 : i32
    %c13_i32 = arith.constant 13 : i32
    %56 = arith.addi %55, %c13_i32 : i32
    %57 = arith.index_cast %56 : i32 to index
    %58 = memref.load %arg3[%57] : memref<32xf32, #tpu.memory_space<smem>>
    %c16_i32_15 = arith.constant 16 : i32
    %59 = arith.muli %arg0, %c16_i32_15 : i32
    %c14_i32 = arith.constant 14 : i32
    %60 = arith.addi %59, %c14_i32 : i32
    %61 = arith.index_cast %60 : i32 to index
    %62 = memref.load %arg3[%61] : memref<32xf32, #tpu.memory_space<smem>>
    %c16_i32_16 = arith.constant 16 : i32
    %63 = arith.muli %arg0, %c16_i32_16 : i32
    %c15_i32 = arith.constant 15 : i32
    %64 = arith.addi %63, %c15_i32 : i32
    %65 = arith.index_cast %64 : i32 to index
    %66 = memref.load %arg3[%65] : memref<32xf32, #tpu.memory_space<smem>>
    %c0 = arith.constant 0 : index
    %67 = memref.load %arg4[%c0] : memref<48xf32, #tpu.memory_space<smem>>
    %c1 = arith.constant 1 : index
    %68 = memref.load %arg4[%c1] : memref<48xf32, #tpu.memory_space<smem>>
    %c2 = arith.constant 2 : index
    %69 = memref.load %arg4[%c2] : memref<48xf32, #tpu.memory_space<smem>>
    %c3 = arith.constant 3 : index
    %70 = memref.load %arg4[%c3] : memref<48xf32, #tpu.memory_space<smem>>
    %c4 = arith.constant 4 : index
    %71 = memref.load %arg4[%c4] : memref<48xf32, #tpu.memory_space<smem>>
    %c5 = arith.constant 5 : index
    %72 = memref.load %arg4[%c5] : memref<48xf32, #tpu.memory_space<smem>>
    %c6 = arith.constant 6 : index
    %73 = memref.load %arg4[%c6] : memref<48xf32, #tpu.memory_space<smem>>
    %c7 = arith.constant 7 : index
    %74 = memref.load %arg4[%c7] : memref<48xf32, #tpu.memory_space<smem>>
    %c8 = arith.constant 8 : index
    %75 = memref.load %arg4[%c8] : memref<48xf32, #tpu.memory_space<smem>>
    %c9 = arith.constant 9 : index
    %76 = memref.load %arg4[%c9] : memref<48xf32, #tpu.memory_space<smem>>
    %c10 = arith.constant 10 : index
    %77 = memref.load %arg4[%c10] : memref<48xf32, #tpu.memory_space<smem>>
    %c11 = arith.constant 11 : index
    %78 = memref.load %arg4[%c11] : memref<48xf32, #tpu.memory_space<smem>>
    %c12 = arith.constant 12 : index
    %79 = memref.load %arg4[%c12] : memref<48xf32, #tpu.memory_space<smem>>
    %c13 = arith.constant 13 : index
    %80 = memref.load %arg4[%c13] : memref<48xf32, #tpu.memory_space<smem>>
    %c14 = arith.constant 14 : index
    %81 = memref.load %arg4[%c14] : memref<48xf32, #tpu.memory_space<smem>>
    %c15 = arith.constant 15 : index
    %82 = memref.load %arg4[%c15] : memref<48xf32, #tpu.memory_space<smem>>
    %c16 = arith.constant 16 : index
    %83 = memref.load %arg4[%c16] : memref<48xf32, #tpu.memory_space<smem>>
    %c17 = arith.constant 17 : index
    %84 = memref.load %arg4[%c17] : memref<48xf32, #tpu.memory_space<smem>>
    %c18 = arith.constant 18 : index
    %85 = memref.load %arg4[%c18] : memref<48xf32, #tpu.memory_space<smem>>
    %c19 = arith.constant 19 : index
    %86 = memref.load %arg4[%c19] : memref<48xf32, #tpu.memory_space<smem>>
    %c20 = arith.constant 20 : index
    %87 = memref.load %arg4[%c20] : memref<48xf32, #tpu.memory_space<smem>>
    %c21 = arith.constant 21 : index
    %88 = memref.load %arg4[%c21] : memref<48xf32, #tpu.memory_space<smem>>
    %c22 = arith.constant 22 : index
    %89 = memref.load %arg4[%c22] : memref<48xf32, #tpu.memory_space<smem>>
    %c23 = arith.constant 23 : index
    %90 = memref.load %arg4[%c23] : memref<48xf32, #tpu.memory_space<smem>>
    %c24 = arith.constant 24 : index
    %91 = memref.load %arg4[%c24] : memref<48xf32, #tpu.memory_space<smem>>
    %c25 = arith.constant 25 : index
    %92 = memref.load %arg4[%c25] : memref<48xf32, #tpu.memory_space<smem>>
    %c26 = arith.constant 26 : index
    %93 = memref.load %arg4[%c26] : memref<48xf32, #tpu.memory_space<smem>>
    %c27 = arith.constant 27 : index
    %94 = memref.load %arg4[%c27] : memref<48xf32, #tpu.memory_space<smem>>
    %c28 = arith.constant 28 : index
    %95 = memref.load %arg4[%c28] : memref<48xf32, #tpu.memory_space<smem>>
    %c29 = arith.constant 29 : index
    %96 = memref.load %arg4[%c29] : memref<48xf32, #tpu.memory_space<smem>>
    %c30 = arith.constant 30 : index
    %97 = memref.load %arg4[%c30] : memref<48xf32, #tpu.memory_space<smem>>
    %c31 = arith.constant 31 : index
    %98 = memref.load %arg4[%c31] : memref<48xf32, #tpu.memory_space<smem>>
    %c32 = arith.constant 32 : index
    %99 = memref.load %arg4[%c32] : memref<48xf32, #tpu.memory_space<smem>>
    %c33 = arith.constant 33 : index
    %100 = memref.load %arg4[%c33] : memref<48xf32, #tpu.memory_space<smem>>
    %c34 = arith.constant 34 : index
    %101 = memref.load %arg4[%c34] : memref<48xf32, #tpu.memory_space<smem>>
    %c35 = arith.constant 35 : index
    %102 = memref.load %arg4[%c35] : memref<48xf32, #tpu.memory_space<smem>>
    %c36 = arith.constant 36 : index
    %103 = memref.load %arg4[%c36] : memref<48xf32, #tpu.memory_space<smem>>
    %c37 = arith.constant 37 : index
    %104 = memref.load %arg4[%c37] : memref<48xf32, #tpu.memory_space<smem>>
    %c38 = arith.constant 38 : index
    %105 = memref.load %arg4[%c38] : memref<48xf32, #tpu.memory_space<smem>>
    %c39 = arith.constant 39 : index
    %106 = memref.load %arg4[%c39] : memref<48xf32, #tpu.memory_space<smem>>
    %c40 = arith.constant 40 : index
    %107 = memref.load %arg4[%c40] : memref<48xf32, #tpu.memory_space<smem>>
    %c41 = arith.constant 41 : index
    %108 = memref.load %arg4[%c41] : memref<48xf32, #tpu.memory_space<smem>>
    %c42 = arith.constant 42 : index
    %109 = memref.load %arg4[%c42] : memref<48xf32, #tpu.memory_space<smem>>
    %c43 = arith.constant 43 : index
    %110 = memref.load %arg4[%c43] : memref<48xf32, #tpu.memory_space<smem>>
    %c44 = arith.constant 44 : index
    %111 = memref.load %arg4[%c44] : memref<48xf32, #tpu.memory_space<smem>>
    %c45 = arith.constant 45 : index
    %112 = memref.load %arg4[%c45] : memref<48xf32, #tpu.memory_space<smem>>
    %c46 = arith.constant 46 : index
    %113 = memref.load %arg4[%c46] : memref<48xf32, #tpu.memory_space<smem>>
    %c47 = arith.constant 47 : index
    %114 = memref.load %arg4[%c47] : memref<48xf32, #tpu.memory_space<smem>>
    %c8_i32_17 = arith.constant 8 : i32
    %115 = arith.muli %arg1, %c8_i32_17 : i32
    %116 = tpu.assume_multiple %115, 8 : i32
    %c0_i32_18 = arith.constant 0 : i32
    %c8_i32_19 = arith.constant 8 : i32
    %117 = arith.muli %c0_i32_18, %c8_i32_19 : i32
    %118 = tpu.assume_multiple %117, 8 : i32
    %c0_20 = arith.constant 0 : index
    %c0_21 = arith.constant 0 : index
    %119 = arith.index_cast %118 : i32 to index
    %c0_22 = arith.constant 0 : index
    %120 = vector.load %arg2[%c0_20, %c0_21, %119, %c0_22] : memref<1x3x8x128xf32, #tpu.memory_space<vmem>>, vector<1x1x8x128xf32>
    %121 = vector.shape_cast %120 : vector<1x1x8x128xf32> to vector<8x128xf32>
    %c0_23 = arith.constant 0 : index
    %c1_24 = arith.constant 1 : index
    %122 = arith.index_cast %118 : i32 to index
    %c0_25 = arith.constant 0 : index
    %123 = vector.load %arg2[%c0_23, %c1_24, %122, %c0_25] : memref<1x3x8x128xf32, #tpu.memory_space<vmem>>, vector<1x1x8x128xf32>
    %124 = vector.shape_cast %123 : vector<1x1x8x128xf32> to vector<8x128xf32>
    %c0_26 = arith.constant 0 : index
    %c2_27 = arith.constant 2 : index
    %125 = arith.index_cast %118 : i32 to index
    %c0_28 = arith.constant 0 : index
    %126 = vector.load %arg2[%c0_26, %c2_27, %125, %c0_28] : memref<1x3x8x128xf32, #tpu.memory_space<vmem>>, vector<1x1x8x128xf32>
    %127 = vector.shape_cast %126 : vector<1x1x8x128xf32> to vector<8x128xf32>
    %128 = vector.broadcast %67 : f32 to vector<8x128xf32>
    %129 = arith.mulf %128, %121 : vector<8x128xf32>
    %130 = vector.broadcast %68 : f32 to vector<8x128xf32>
    %131 = arith.mulf %130, %124 : vector<8x128xf32>
    %132 = arith.addf %129, %131 : vector<8x128xf32>
    %133 = vector.broadcast %69 : f32 to vector<8x128xf32>
    %134 = arith.mulf %133, %127 : vector<8x128xf32>
    %135 = arith.addf %132, %134 : vector<8x128xf32>
    %cst = arith.constant 0.000000e+00 : f32
    %136 = vector.broadcast %cst : f32 to vector<8x128xf32>
    %137 = arith.maximumf %135, %136 : vector<8x128xf32>
    %138 = vector.broadcast %6 : f32 to vector<8x128xf32>
    %139 = arith.mulf %138, %137 : vector<8x128xf32>
    %140 = vector.broadcast %70 : f32 to vector<8x128xf32>
    %141 = arith.mulf %140, %121 : vector<8x128xf32>
    %142 = vector.broadcast %71 : f32 to vector<8x128xf32>
    %143 = arith.mulf %142, %124 : vector<8x128xf32>
    %144 = arith.addf %141, %143 : vector<8x128xf32>
    %145 = vector.broadcast %72 : f32 to vector<8x128xf32>
    %146 = arith.mulf %145, %127 : vector<8x128xf32>
    %147 = arith.addf %144, %146 : vector<8x128xf32>
    %cst_29 = arith.constant 0.000000e+00 : f32
    %148 = vector.broadcast %cst_29 : f32 to vector<8x128xf32>
    %149 = arith.maximumf %147, %148 : vector<8x128xf32>
    %150 = vector.broadcast %10 : f32 to vector<8x128xf32>
    %151 = arith.mulf %150, %149 : vector<8x128xf32>
    %152 = arith.addf %139, %151 : vector<8x128xf32>
    %153 = vector.broadcast %73 : f32 to vector<8x128xf32>
    %154 = arith.mulf %153, %121 : vector<8x128xf32>
    %155 = vector.broadcast %74 : f32 to vector<8x128xf32>
    %156 = arith.mulf %155, %124 : vector<8x128xf32>
    %157 = arith.addf %154, %156 : vector<8x128xf32>
    %158 = vector.broadcast %75 : f32 to vector<8x128xf32>
    %159 = arith.mulf %158, %127 : vector<8x128xf32>
    %160 = arith.addf %157, %159 : vector<8x128xf32>
    %cst_30 = arith.constant 0.000000e+00 : f32
    %161 = vector.broadcast %cst_30 : f32 to vector<8x128xf32>
    %162 = arith.maximumf %160, %161 : vector<8x128xf32>
    %163 = vector.broadcast %14 : f32 to vector<8x128xf32>
    %164 = arith.mulf %163, %162 : vector<8x128xf32>
    %165 = arith.addf %152, %164 : vector<8x128xf32>
    %166 = vector.broadcast %76 : f32 to vector<8x128xf32>
    %167 = arith.mulf %166, %121 : vector<8x128xf32>
    %168 = vector.broadcast %77 : f32 to vector<8x128xf32>
    %169 = arith.mulf %168, %124 : vector<8x128xf32>
    %170 = arith.addf %167, %169 : vector<8x128xf32>
    %171 = vector.broadcast %78 : f32 to vector<8x128xf32>
    %172 = arith.mulf %171, %127 : vector<8x128xf32>
    %173 = arith.addf %170, %172 : vector<8x128xf32>
    %cst_31 = arith.constant 0.000000e+00 : f32
    %174 = vector.broadcast %cst_31 : f32 to vector<8x128xf32>
    %175 = arith.maximumf %173, %174 : vector<8x128xf32>
    %176 = vector.broadcast %18 : f32 to vector<8x128xf32>
    %177 = arith.mulf %176, %175 : vector<8x128xf32>
    %178 = arith.addf %165, %177 : vector<8x128xf32>
    %179 = vector.broadcast %79 : f32 to vector<8x128xf32>
    %180 = arith.mulf %179, %121 : vector<8x128xf32>
    %181 = vector.broadcast %80 : f32 to vector<8x128xf32>
    %182 = arith.mulf %181, %124 : vector<8x128xf32>
    %183 = arith.addf %180, %182 : vector<8x128xf32>
    %184 = vector.broadcast %81 : f32 to vector<8x128xf32>
    %185 = arith.mulf %184, %127 : vector<8x128xf32>
    %186 = arith.addf %183, %185 : vector<8x128xf32>
    %cst_32 = arith.constant 0.000000e+00 : f32
    %187 = vector.broadcast %cst_32 : f32 to vector<8x128xf32>
    %188 = arith.maximumf %186, %187 : vector<8x128xf32>
    %189 = vector.broadcast %22 : f32 to vector<8x128xf32>
    %190 = arith.mulf %189, %188 : vector<8x128xf32>
    %191 = arith.addf %178, %190 : vector<8x128xf32>
    %192 = vector.broadcast %82 : f32 to vector<8x128xf32>
    %193 = arith.mulf %192, %121 : vector<8x128xf32>
    %194 = vector.broadcast %83 : f32 to vector<8x128xf32>
    %195 = arith.mulf %194, %124 : vector<8x128xf32>
    %196 = arith.addf %193, %195 : vector<8x128xf32>
    %197 = vector.broadcast %84 : f32 to vector<8x128xf32>
    %198 = arith.mulf %197, %127 : vector<8x128xf32>
    %199 = arith.addf %196, %198 : vector<8x128xf32>
    %cst_33 = arith.constant 0.000000e+00 : f32
    %200 = vector.broadcast %cst_33 : f32 to vector<8x128xf32>
    %201 = arith.maximumf %199, %200 : vector<8x128xf32>
    %202 = vector.broadcast %26 : f32 to vector<8x128xf32>
    %203 = arith.mulf %202, %201 : vector<8x128xf32>
    %204 = arith.addf %191, %203 : vector<8x128xf32>
    %205 = vector.broadcast %85 : f32 to vector<8x128xf32>
    %206 = arith.mulf %205, %121 : vector<8x128xf32>
    %207 = vector.broadcast %86 : f32 to vector<8x128xf32>
    %208 = arith.mulf %207, %124 : vector<8x128xf32>
    %209 = arith.addf %206, %208 : vector<8x128xf32>
    %210 = vector.broadcast %87 : f32 to vector<8x128xf32>
    %211 = arith.mulf %210, %127 : vector<8x128xf32>
    %212 = arith.addf %209, %211 : vector<8x128xf32>
    %cst_34 = arith.constant 0.000000e+00 : f32
    %213 = vector.broadcast %cst_34 : f32 to vector<8x128xf32>
    %214 = arith.maximumf %212, %213 : vector<8x128xf32>
    %215 = vector.broadcast %30 : f32 to vector<8x128xf32>
    %216 = arith.mulf %215, %214 : vector<8x128xf32>
    %217 = arith.addf %204, %216 : vector<8x128xf32>
    %218 = vector.broadcast %88 : f32 to vector<8x128xf32>
    %219 = arith.mulf %218, %121 : vector<8x128xf32>
    %220 = vector.broadcast %89 : f32 to vector<8x128xf32>
    %221 = arith.mulf %220, %124 : vector<8x128xf32>
    %222 = arith.addf %219, %221 : vector<8x128xf32>
    %223 = vector.broadcast %90 : f32 to vector<8x128xf32>
    %224 = arith.mulf %223, %127 : vector<8x128xf32>
    %225 = arith.addf %222, %224 : vector<8x128xf32>
    %cst_35 = arith.constant 0.000000e+00 : f32
    %226 = vector.broadcast %cst_35 : f32 to vector<8x128xf32>
    %227 = arith.maximumf %225, %226 : vector<8x128xf32>
    %228 = vector.broadcast %34 : f32 to vector<8x128xf32>
    %229 = arith.mulf %228, %227 : vector<8x128xf32>
    %230 = arith.addf %217, %229 : vector<8x128xf32>
    %231 = vector.broadcast %91 : f32 to vector<8x128xf32>
    %232 = arith.mulf %231, %121 : vector<8x128xf32>
    %233 = vector.broadcast %92 : f32 to vector<8x128xf32>
    %234 = arith.mulf %233, %124 : vector<8x128xf32>
    %235 = arith.addf %232, %234 : vector<8x128xf32>
    %236 = vector.broadcast %93 : f32 to vector<8x128xf32>
    %237 = arith.mulf %236, %127 : vector<8x128xf32>
    %238 = arith.addf %235, %237 : vector<8x128xf32>
    %cst_36 = arith.constant 0.000000e+00 : f32
    %239 = vector.broadcast %cst_36 : f32 to vector<8x128xf32>
    %240 = arith.maximumf %238, %239 : vector<8x128xf32>
    %241 = vector.broadcast %38 : f32 to vector<8x128xf32>
    %242 = arith.mulf %241, %240 : vector<8x128xf32>
    %243 = arith.addf %230, %242 : vector<8x128xf32>
    %244 = vector.broadcast %94 : f32 to vector<8x128xf32>
    %245 = arith.mulf %244, %121 : vector<8x128xf32>
    %246 = vector.broadcast %95 : f32 to vector<8x128xf32>
    %247 = arith.mulf %246, %124 : vector<8x128xf32>
    %248 = arith.addf %245, %247 : vector<8x128xf32>
    %249 = vector.broadcast %96 : f32 to vector<8x128xf32>
    %250 = arith.mulf %249, %127 : vector<8x128xf32>
    %251 = arith.addf %248, %250 : vector<8x128xf32>
    %cst_37 = arith.constant 0.000000e+00 : f32
    %252 = vector.broadcast %cst_37 : f32 to vector<8x128xf32>
    %253 = arith.maximumf %251, %252 : vector<8x128xf32>
    %254 = vector.broadcast %42 : f32 to vector<8x128xf32>
    %255 = arith.mulf %254, %253 : vector<8x128xf32>
    %256 = arith.addf %243, %255 : vector<8x128xf32>
    %257 = vector.broadcast %97 : f32 to vector<8x128xf32>
    %258 = arith.mulf %257, %121 : vector<8x128xf32>
    %259 = vector.broadcast %98 : f32 to vector<8x128xf32>
    %260 = arith.mulf %259, %124 : vector<8x128xf32>
    %261 = arith.addf %258, %260 : vector<8x128xf32>
    %262 = vector.broadcast %99 : f32 to vector<8x128xf32>
    %263 = arith.mulf %262, %127 : vector<8x128xf32>
    %264 = arith.addf %261, %263 : vector<8x128xf32>
    %cst_38 = arith.constant 0.000000e+00 : f32
    %265 = vector.broadcast %cst_38 : f32 to vector<8x128xf32>
    %266 = arith.maximumf %264, %265 : vector<8x128xf32>
    %267 = vector.broadcast %46 : f32 to vector<8x128xf32>
    %268 = arith.mulf %267, %266 : vector<8x128xf32>
    %269 = arith.addf %256, %268 : vector<8x128xf32>
    %270 = vector.broadcast %100 : f32 to vector<8x128xf32>
    %271 = arith.mulf %270, %121 : vector<8x128xf32>
    %272 = vector.broadcast %101 : f32 to vector<8x128xf32>
    %273 = arith.mulf %272, %124 : vector<8x128xf32>
    %274 = arith.addf %271, %273 : vector<8x128xf32>
    %275 = vector.broadcast %102 : f32 to vector<8x128xf32>
    %276 = arith.mulf %275, %127 : vector<8x128xf32>
    %277 = arith.addf %274, %276 : vector<8x128xf32>
    %cst_39 = arith.constant 0.000000e+00 : f32
    %278 = vector.broadcast %cst_39 : f32 to vector<8x128xf32>
    %279 = arith.maximumf %277, %278 : vector<8x128xf32>
    %280 = vector.broadcast %50 : f32 to vector<8x128xf32>
    %281 = arith.mulf %280, %279 : vector<8x128xf32>
    %282 = arith.addf %269, %281 : vector<8x128xf32>
    %283 = vector.broadcast %103 : f32 to vector<8x128xf32>
    %284 = arith.mulf %283, %121 : vector<8x128xf32>
    %285 = vector.broadcast %104 : f32 to vector<8x128xf32>
    %286 = arith.mulf %285, %124 : vector<8x128xf32>
    %287 = arith.addf %284, %286 : vector<8x128xf32>
    %288 = vector.broadcast %105 : f32 to vector<8x128xf32>
    %289 = arith.mulf %288, %127 : vector<8x128xf32>
    %290 = arith.addf %287, %289 : vector<8x128xf32>
    %cst_40 = arith.constant 0.000000e+00 : f32
    %291 = vector.broadcast %cst_40 : f32 to vector<8x128xf32>
    %292 = arith.maximumf %290, %291 : vector<8x128xf32>
    %293 = vector.broadcast %54 : f32 to vector<8x128xf32>
    %294 = arith.mulf %293, %292 : vector<8x128xf32>
    %295 = arith.addf %282, %294 : vector<8x128xf32>
    %296 = vector.broadcast %106 : f32 to vector<8x128xf32>
    %297 = arith.mulf %296, %121 : vector<8x128xf32>
    %298 = vector.broadcast %107 : f32 to vector<8x128xf32>
    %299 = arith.mulf %298, %124 : vector<8x128xf32>
    %300 = arith.addf %297, %299 : vector<8x128xf32>
    %301 = vector.broadcast %108 : f32 to vector<8x128xf32>
    %302 = arith.mulf %301, %127 : vector<8x128xf32>
    %303 = arith.addf %300, %302 : vector<8x128xf32>
    %cst_41 = arith.constant 0.000000e+00 : f32
    %304 = vector.broadcast %cst_41 : f32 to vector<8x128xf32>
    %305 = arith.maximumf %303, %304 : vector<8x128xf32>
    %306 = vector.broadcast %58 : f32 to vector<8x128xf32>
    %307 = arith.mulf %306, %305 : vector<8x128xf32>
    %308 = arith.addf %295, %307 : vector<8x128xf32>
    %309 = vector.broadcast %109 : f32 to vector<8x128xf32>
    %310 = arith.mulf %309, %121 : vector<8x128xf32>
    %311 = vector.broadcast %110 : f32 to vector<8x128xf32>
    %312 = arith.mulf %311, %124 : vector<8x128xf32>
    %313 = arith.addf %310, %312 : vector<8x128xf32>
    %314 = vector.broadcast %111 : f32 to vector<8x128xf32>
    %315 = arith.mulf %314, %127 : vector<8x128xf32>
    %316 = arith.addf %313, %315 : vector<8x128xf32>
    %cst_42 = arith.constant 0.000000e+00 : f32
    %317 = vector.broadcast %cst_42 : f32 to vector<8x128xf32>
    %318 = arith.maximumf %316, %317 : vector<8x128xf32>
    %319 = vector.broadcast %62 : f32 to vector<8x128xf32>
    %320 = arith.mulf %319, %318 : vector<8x128xf32>
    %321 = arith.addf %308, %320 : vector<8x128xf32>
    %322 = vector.broadcast %112 : f32 to vector<8x128xf32>
    %323 = arith.mulf %322, %121 : vector<8x128xf32>
    %324 = vector.broadcast %113 : f32 to vector<8x128xf32>
    %325 = arith.mulf %324, %124 : vector<8x128xf32>
    %326 = arith.addf %323, %325 : vector<8x128xf32>
    %327 = vector.broadcast %114 : f32 to vector<8x128xf32>
    %328 = arith.mulf %327, %127 : vector<8x128xf32>
    %329 = arith.addf %326, %328 : vector<8x128xf32>
    %cst_43 = arith.constant 0.000000e+00 : f32
    %330 = vector.broadcast %cst_43 : f32 to vector<8x128xf32>
    %331 = arith.maximumf %329, %330 : vector<8x128xf32>
    %332 = vector.broadcast %66 : f32 to vector<8x128xf32>
    %333 = arith.mulf %332, %331 : vector<8x128xf32>
    %334 = arith.addf %321, %333 : vector<8x128xf32>
    %cst_44 = arith.constant 0.000000e+00 : f32
    %335 = vector.broadcast %cst_44 : f32 to vector<8x128xf32>
    %336 = arith.maximumf %334, %335 : vector<8x128xf32>
    %c0_45 = arith.constant 0 : index
    %c0_46 = arith.constant 0 : index
    %337 = vector.load %arg6[%c0_45, %c0_46] : memref<1x1xf32, #tpu.memory_space<vmem>>, vector<1x1xf32>
    %338 = vector.shape_cast %336 : vector<8x128xf32> to vector<1x8x128xf32>
    %cst_47 = arith.constant dense<0x7F800000> : vector<1xf32>
    %339 = vector.multi_reduction <minimumf>, %338, %cst_47 [1, 2] : vector<1x8x128xf32> to vector<1xf32>
    %340 = vector.shape_cast %339 : vector<1xf32> to vector<1x1x1xf32>
    %341 = vector.extract %340[0, 0, 0] : f32 from vector<1x1x1xf32>
    %342 = vector.broadcast %341 : f32 to vector<1x1xf32>
    %343 = arith.minimumf %337, %342 : vector<1x1xf32>
    %c0_48 = arith.constant 0 : index
    %c0_49 = arith.constant 0 : index
    %344 = vector.load %arg6[%c0_48, %c0_49] : memref<1x1xf32, #tpu.memory_space<vmem>>, vector<1x1xf32>
    tpu.vector_store %arg6[%c0_48, %c0_49], %343 {strides = array<i32>} : memref<1x1xf32, #tpu.memory_space<vmem>>, vector<1x1xf32>,
    %c0_50 = arith.constant 0 : index
    %c0_51 = arith.constant 0 : index
    %345 = vector.load %arg7[%c0_50, %c0_51] : memref<1x1xf32, #tpu.memory_space<vmem>>, vector<1x1xf32>
    %346 = vector.shape_cast %336 : vector<8x128xf32> to vector<1x8x128xf32>
    %cst_52 = arith.constant dense<0xFF800000> : vector<1xf32>
    %347 = vector.multi_reduction <maximumf>, %346, %cst_52 [1, 2] : vector<1x8x128xf32> to vector<1xf32>
    %348 = vector.shape_cast %347 : vector<1xf32> to vector<1x1x1xf32>
    %349 = vector.extract %348[0, 0, 0] : f32 from vector<1x1x1xf32>
    %350 = vector.broadcast %349 : f32 to vector<1x1xf32>
    %351 = arith.maximumf %345, %350 : vector<1x1xf32>
    %c0_53 = arith.constant 0 : index
    %c0_54 = arith.constant 0 : index
    %352 = vector.load %arg7[%c0_53, %c0_54] : memref<1x1xf32, #tpu.memory_space<vmem>>, vector<1x1xf32>
    tpu.vector_store %arg7[%c0_53, %c0_54], %351 {strides = array<i32>} : memref<1x1xf32, #tpu.memory_space<vmem>>, vector<1x1xf32>,
    %353 = arith.addi %116, %118 : i32
    %354 = tpu.assume_multiple %353, 8 : i32
    %c0_55 = arith.constant 0 : index
    %c0_56 = arith.constant 0 : index
    %355 = arith.index_cast %354 : i32 to index
    %c0_57 = arith.constant 0 : index
    %356 = vector.load %arg5[%c0_55, %c0_56, %355, %c0_57] : memref<1x1x16x128xf32, #tpu.memory_space<vmem>>, vector<1x1x8x128xf32>
    %357 = vector.shape_cast %356 : vector<1x1x8x128xf32> to vector<8x128xf32>
    %358 = vector.shape_cast %336 : vector<8x128xf32> to vector<1x1x8x128xf32>
    tpu.vector_store %arg5[%c0_55, %c0_56, %355, %c0_57], %358 {strides = array<i32>} : memref<1x1x16x128xf32, #tpu.memory_space<vmem>>, vector<1x1x8x128xf32>,
    %c1_i32_58 = arith.constant 1 : i32
    %c1_i32_59 = arith.constant 1 : i32
    %359 = arith.cmpi eq, %arg1, %c1_i32_59 : i32
    %360 = arith.extui %359 : i1 to i32
    %c0_i32_60 = arith.constant 0 : i32
    %361 = arith.cmpi ne, %360, %c0_i32_60 : i32
    scf.if %361 {
      %c0_61 = arith.constant 0 : index
      %c0_62 = arith.constant 0 : index
      %362 = vector.load %arg6[%c0_61, %c0_62] : memref<1x1xf32, #tpu.memory_space<vmem>>, vector<1x1xf32>
      %c0_63 = arith.constant 0 : index
      %c0_64 = arith.constant 0 : index
      %363 = vector.load %arg7[%c0_63, %c0_64] : memref<1x1xf32, #tpu.memory_space<vmem>>, vector<1x1xf32>
      %364 = arith.subf %363, %362 : vector<1x1xf32>
      %cst_65 = arith.constant 9.99999997E-7 : f32
      %365 = vector.broadcast %cst_65 : f32 to vector<1x1xf32>
      %366 = arith.addf %364, %365 : vector<1x1xf32>
      %cst_66 = arith.constant 1.000000e+00 : f32
      %367 = vector.broadcast %cst_66 : f32 to vector<1x1xf32>
      %368 = arith.divf %367, %366 : vector<1x1xf32>
      %c0_67 = arith.constant 0 : index
      %c0_68 = arith.constant 0 : index
      %c0_69 = arith.constant 0 : index
      %c0_70 = arith.constant 0 : index
      %369 = vector.load %arg5[%c0_67, %c0_68, %c0_69, %c0_70] : memref<1x1x16x128xf32, #tpu.memory_space<vmem>>, vector<1x1x16x128xf32>
      %370 = vector.shape_cast %369 : vector<1x1x16x128xf32> to vector<16x128xf32>
      %371 = vector.broadcast %362 : vector<1x1xf32> to vector<16x128xf32>
      %372 = arith.subf %370, %371 : vector<16x128xf32>
      %373 = vector.broadcast %368 : vector<1x1xf32> to vector<16x128xf32>
      %374 = arith.mulf %372, %373 : vector<16x128xf32>
      %c0_71 = arith.constant 0 : index
      %c0_72 = arith.constant 0 : index
      %c0_73 = arith.constant 0 : index
      %c0_74 = arith.constant 0 : index
      %375 = vector.load %arg5[%c0_71, %c0_72, %c0_73, %c0_74] : memref<1x1x16x128xf32, #tpu.memory_space<vmem>>, vector<1x1x16x128xf32>
      %376 = vector.shape_cast %375 : vector<1x1x16x128xf32> to vector<16x128xf32>
      %377 = vector.shape_cast %374 : vector<16x128xf32> to vector<1x1x16x128xf32>
      tpu.vector_store %arg5[%c0_71, %c0_72, %c0_73, %c0_74], %377 {strides = array<i32>} : memref<1x1x16x128xf32, #tpu.memory_space<vmem>>, vector<1x1x16x128xf32>,
    } else {
    }
    return
  }
  func.func @transform_0(%arg0: i32, %arg1: i32) -> (i32, i32, i32, i32) {
    %c0_i32 = arith.constant 0 : i32
    %c0_i32_0 = arith.constant 0 : i32
    %c0_i32_1 = arith.constant 0 : i32
    return %arg0, %c0_i32, %arg1, %c0_i32_0 : i32, i32, i32, i32
  }
  func.func @transform_1(%arg0: i32, %arg1: i32) -> i32 {
    %c0_i32 = arith.constant 0 : i32
    %c0_i32_0 = arith.constant 0 : i32
    return %c0_i32 : i32
  }
  func.func @transform_2(%arg0: i32, %arg1: i32) -> i32 {
    %c0_i32 = arith.constant 0 : i32
    %c0_i32_0 = arith.constant 0 : i32
    return %c0_i32 : i32
  }
  func.func @transform_3(%arg0: i32, %arg1: i32) -> (i32, i32, i32, i32) {
    %c0_i32 = arith.constant 0 : i32
    %c0_i32_0 = arith.constant 0 : i32
    %c0_i32_1 = arith.constant 0 : i32
    %c0_i32_2 = arith.constant 0 : i32
    return %arg0, %c0_i32, %c0_i32_0, %c0_i32_1 : i32, i32, i32, i32
  }
}

</mosaic_0001>

<bundles_post_ra>
// kernel: tpu_custom_call.1
= control target key start
LH: loop header
LB: loop body
LE: loop exit
PB: predicated region body
PF: predicated region fallthrough
CT: control target
= control target key end

     0   :  { %s1718_s0 = inlined_call_operand.hbm [shape: f32[2,3,16,128], index: 0, kind: input, shape index: {}]   ;;  %s1719_s1 = inlined_call_operand.vmem [shape: f32[32], index: 1, kind: input, shape index: {}]   ;;  %s1720_s2 = inlined_call_operand.vmem [shape: f32[48], index: 2, kind: input, shape index: {}]   ;;  %s1721_s3 = inlined_call_operand.hbm [shape: f32[2,1,16,128], index: 3, kind: output, shape index: {}]  }
   0x1   :  { %1745 = sst [smem:[#allocation31_spill]] %s1718_s0 }
   0x2   :  { %1746 = sst [smem:[#allocation32_spill]] %s1719_s1 }
   0x3   :  { %1747 = sst [smem:[#allocation33_spill]] %s1720_s2 }
   0x4   :  { %1748 = sst [smem:[#allocation34_spill]] %s1721_s3 }
   0x5   :  { %8 = vsyncpa [#allocation5], 0 }
   0x6   :  { %10 = vsyncpa [#allocation5 + $0x1], 0 }
   0x7   :  { %11 = vsyncpa [#allocation7], 0 }
   0x8   :  { %12 = vsyncpa [#allocation10], 0 }
   0x9   :  { %13 = vsyncpa [#allocation6], 0 }
   0xa   :  { %15 = vsyncpa [#allocation6 + $0x1], 0  ;;  %s1145_s12 = smov 0   ;;  %s1147_s13 = smov 0  }
   0xb   :  { %s1149_s14 = smov 0   ;;  %s1151_s15 = smov 0  }
   0xc   :  { %s1153_s16 = smov 0   ;;  %s1155_s17 = smov 0  }
   0xd   :  { %s1157_s18 = smov 0   ;;  %s1159_s19 = smov 0  }
   0xe   :  { %s1161_s20 = smov 0   ;;  %s1163_s21 = smov 0  }
   0xf   :  { %s1165_s22 = smov 0  }
  0x10 LB: > { %1749 = sst [smem:[#allocation16_spill]] %s1071_s12  ;;  %s710_s23 = sadd.s32 4294967295, %s1111_s22   ;;  %s1111_s22 = sphi %s1165_s22, %s21_s22   ;;  %s1107_s21 = sphi %s1163_s21, %s1801_s21   ;;  %s1103_s20 = sphi %s1161_s20, %s1800_s20   ;;  %s1099_s19 = sphi %s1159_s19, %s1799_s19   ;;  %s1095_s18 = sphi %s1157_s18, %s1798_s18   ;;  %s1091_s17 = sphi %s1155_s17, %s1797_s17   ;;  %s1087_s16 = sphi %s1153_s16, %s1796_s16   ;;  %s1083_s15 = sphi %s1151_s15, %s1795_s15   ;;  %s1079_s14 = sphi %s1149_s14, %s1794_s14   ;;  %s1075_s13 = sphi %s1147_s13, %s1793_s13   ;;  %s1071_s12 = sphi %s1145_s12, %s1792_s12  }
  0x11   : > { %1750 = sst [smem:[#allocation17_spill]] %s1075_s13  ;;  %s711_s24 = sadd.s32 4294967294, %s1111_s22  }
  0x12   : > { %1751 = sst [smem:[#allocation18_spill]] %s1079_s14  ;;  %p49_p0 = scmp.ne.s32.totalorder %s1091_s17, %s1087_s16 }
  0x13   : > { %1752 = sst [smem:[#allocation19_spill]] %s1087_s16  ;;  %p50_p1 = scmp.eq.s32.totalorder %s1111_s22, 0 }
  0x14   : > { %1753 = sst [smem:[#allocation20_spill]] %s1091_s17  ;;  %p55_p2 = scmp.ne.s32.totalorder %s1087_s16, %s1083_s15 }
  0x15   : > { %1754 = sst [smem:[#allocation21_spill]] %s1099_s19  ;;  %p1205_p3 = scmp.eq.s32.totalorder %s710_s23, 0 }
  0x16   : > { %1755 = sst [smem:[#allocation22_spill]] %s1103_s20  ;;  %p1210_p4 = por %p50_p1, %p49_p0 }
  0x17   : > { %1756 = sst [smem:[#allocation23_spill]] %s1107_s21  ;;  %p120_p5 = scmp.ne.s32.totalorder %s1079_s14, %s1075_s13 }
  0x18   : > { %1757 = sst [smem:[#allocation24_spill]] %s1111_s22  ;;  %p1218_p6 = por %p1205_p3, %p55_p2 }
  0x19   : > { %s1758_s26 = scalar_select %p1205_p3, 1, 0 }
  0x1a   : > { %s1760_s29 = scalar_select %p1218_p6, 1, 0 }
  0x1b   : > { %p121_p7 = scmp.eq.s32.totalorder %s710_s23, 3  ;;  %p126_p8 = scmp.ne.s32.totalorder %s1075_s13, %s1071_s12 }
  0x1c   : > { %p127_p9 = scmp.eq.s32.totalorder %s711_s24, 3  ;;  %p712_p11 = scmp.ge.s32.totalorder %s1111_s22, 1 }
  0x1d   : > { %p1224_p10 = por %p121_p7, %p120_p5  ;;  %p134_p13 = scmp.lt.s32.totalorder %s1111_s22, 5 }
  0x1e   : > { %p1229_p12 = por %p127_p9, %p126_p8  ;;  %s1765_s1 = sld [smem:[#allocation32_spill]] }
  0x1f   : > { %s1761_s30 = scalar_select %p1224_p10, 1, 0 }
  0x20   : > { %s1763_s4 = scalar_select %p1229_p12, 1, 0 }
  0x21   : > { %1762 = sst [smem:[#allocation25_spill]] %s1761_s30  ;;  %p1237_p0 = pnand %p712_p11, %p134_p13 }
  0x22   : > { %1764 = sst [smem:[#allocation26_spill]] %s1763_s4  ;;  %p816_p2 = scmp.lt.s32.totalorder %s1111_s22, 4 }
  0x23   : > { %s1766_s8 = scalar_select %p1237_p0, 1, 0 }
  0x24   : > { %s147_s7 = sshll.u32 %s1765_s1, 4  ;;  %p799_p1 = pneg %p1237_p0  ;;  %s148_s7 = int_to_ptr.vmem [resolvable:$true] %s147_s7 }
  0x25   : > { %s1767_s2 = sld [smem:[#allocation33_spill]]  ;;  %p1255_p7 = pnand %p816_p2, %p1210_p4 }
  0x26   : > { %p1249_p5 = pnand %p799_p1, %p1205_p3  ;;  %s921_s24 = scalar_lea.vmem %s148_s7, 16 }
  0x27   : > { %s1769_s23 = scalar_select %p1255_p7, 1, 0 }
  0x28   : > { %p922_p8 = scmp.ne.s32.totalorder %s148_s7, %s921_s24  ;;  %p923_p9 = pneg %p1249_p5 }
  0x29   : > { %p929_p12 = scmp.lt.s32.totalorder %s148_s7, %s148_s7  ;;  %p930_p10 = scmp.lt.s32.totalorder %s921_s24, %s921_s24 }
  0x2a   : > { %p924_p11 = pnand %p923_p9, %p922_p8 }
  0x2b   : > { %s158_s11 = sshll.u32 %s1767_s2, 4  ;;  %p931_p6 = por %p930_p10, %p929_p12  ;;  %s159_s11 = int_to_ptr.vmem [resolvable:$true] %s158_s11 }
  0x2c   : > { %p925_p13 = pneg %p924_p11 }
  0x2e   : > { %p932_p1 = pnand %p931_p6, %p925_p13 }
  0x30   : > { %935 = shalt.err (!%p932_p1)
}
  0x31   : > { %s1113_s5 = smov [#allocation8]   ;;  %s936_s28 = scalar_lea.vmem %s159_s11, 16 }
  0x32   : > { %802 = dma.vmem_to_smem (!%p1249_p5), %s148_s7, 16, %s1113_s5, [#allocation7]  }
  0x33   : > { %p937_p4 = scmp.ne.s32.totalorder %s159_s11, %s936_s28  ;;  %p944_p0 = scmp.lt.s32.totalorder %s159_s11, %s159_s11 }
  0x34   : > { %p945_p7 = scmp.lt.s32.totalorder %s936_s28, %s936_s28 }
  0x35   : > { %p939_p2 = pnand %p937_p4, %p923_p9 }
  0x36   : > { %p946_p8 = por %p945_p7, %p944_p0 }
  0x37   : > { %p940_p3 = pneg %p939_p2 }
  0x39   : > { %p947_p11 = pnand %p946_p8, %p940_p3 }
  0x3b   : > { %950 = shalt.err (!%p947_p11)
}
  0x3c   : > { %s1114_s6 = smov [#allocation9]   ;;  %s30_s7 = sadd.s32 1, %s1103_s20 }
  0x3d   : > { %805 = dma.vmem_to_smem (!%p1249_p5), %s159_s11, 16, %s1114_s6, [#allocation10]  }
  0x3e   : > { %p31_p6 = scmp.ge.s32.totalorder %s30_s7, 2  ;;  %s33_s9 = sadd.s32 1, %s1107_s21 }
  0x3f   : > { %s169_s10 = sand.u32 1, %s1091_s17   ;;  %s781_s24 = smul.u32 6, %s1107_s21 }
  0x40   : > { %s1803_s7 = smov (%p31_p6, %s30_s7), 0  ;;  %s1805_s9 = smov (!%p31_p6, %s33_s9), %s1107_s21 }
  0x41   : > { %1770 = sst [smem:[#allocation27_spill]] %s1803_s7  ;;  %s38_s15 = ssub.s32 %s1103_s20, %s1803_s7 }
  0x42   : > { %p35_p3 = scmp.ge.s32.totalorder %s1805_s9, 2  ;;  %s780_s5 = smul.u32 24, %s169_s10 }
  0x43   : > { %s178_s28 = sadd.s32 %s1103_s20, %s781_s24  ;;  %s1772_s0 = sld [smem:[#allocation31_spill]] }
  0x44   : > { %s1807_s9 = smov (%p35_p3, %s1805_s9), 0  ;;  %s716_s11 = sshll.u32 %s178_s28, 7 }
  0x45   : > { %1771 = sst [smem:[#allocation28_spill]] %s1807_s9  ;;  %s37_s6 = ssub.s32 %s1107_s21, %s1807_s9 }
  0x46   : > { %s39_s2 = sor.u32 %s38_s15, %s37_s6  ;;  %p108_p10 = scmp.eq.s32.totalorder %s37_s6, 0 }
  0x47   : > { %p40_p12 = scmp.eq.s32.totalorder %s39_s2, 0  ;;  %s173_s24 = scalar_lea.vmem [#allocation4], %s780_s5 }
  0x48   : > { %s181_s7 = sshll.u32 %s173_s24, 4  ;;  %s1773_s20 = sadd.s32 1, %s1079_s14  ;;  %s1294_s7 = int_to_ptr.vmem [resolvable:$true] %s181_s7 }
  0x49   : > { %s1282_s1 = scalar_lea.hbm %s1772_s0, %s716_s11  ;;  %s1775_s12 = sadd.s32 1, %s1091_s17 }
  0x4a   : > { %s1287_s4 = scalar_select %p108_p10, %s1079_s14, %s1773_s20  }
  0x4b   : > { %s1292_s28 = scalar_select %p40_p12, %s1091_s17, %s1775_s12  }
  0x4c   : > { %1774 = sst [smem:[#allocation29_spill]] %s1287_s4  ;;  %s1296_s25 = scalar_lea.sflag [#allocation5], %s169_s10 }
  0x4d   : > { %1776 = sst [smem:[#allocation30_spill]] %s1292_s28  ;;  %s951_s27 = scalar_lea.hbm %s1282_s1, 384 }
  0x4e   : > { %p952_p0 = scmp.ne.s32.totalorder %s1282_s1, %s951_s27  ;;  %p1777_p5 = scmp.ne.s32.totalorder %s1769_s23, 0 }
  0x4f   : > { %s956_s20 = scalar_lea.hbm %s1772_s0, 1536  ;;  %p957_p1 = scmp.lt.u32.totalorder %s1282_s1, %s1772_s0 }
  0x50   : > { %p953_p7 = pneg %p1777_p5  ;;  %p958_p4 = scmp.lt.u32.totalorder %s956_s20, %s951_s27 }
  0x51   : > { %p960_p8 = scmp.lt.u32.totalorder %s951_s27, %s1282_s1 }
  0x52   : > { %p954_p9 = pnand %p953_p7, %p952_p0  ;;  %p959_p2 = por %p958_p4, %p957_p1 }
  0x54   : > { %p955_p13 = pneg %p954_p9  ;;  %p961_p11 = por %p960_p8, %p959_p2 }
  0x56   : > { %p962_p6 = pnand %p961_p11, %p955_p13 }
  0x58   : > { %965 = shalt.err (!%p962_p6)
}
  0x59   : > { %s966_s12 = scalar_lea.vmem %s1294_s7, 384  ;;  %s1115_s10 = smov [#allocation4]  }
  0x5a   : > { %p967_p3 = scmp.ne.s32.totalorder %s1294_s7, %s966_s12  ;;  %s971_s6 = sshll.u32 %s1115_s10, 4  ;;  %s972_s6 = int_to_ptr.vmem [resolvable:$false] %s971_s6 }
  0x5b   : > { %s973_s24 = scalar_lea.vmem %s972_s6, 768  ;;  %p974_p0 = scmp.lt.s32.totalorder %s1294_s7, %s972_s6 }
  0x5c   : > { %p969_p10 = pnand %p967_p3, %p953_p7  ;;  %p975_p9 = scmp.lt.s32.totalorder %s973_s24, %s966_s12 }
  0x5e   : > { %p970_p12 = pneg %p969_p10  ;;  %p976_p1 = por %p975_p9, %p974_p0 }
  0x60   : > { %p977_p4 = pnand %p976_p1, %p970_p12 }
  0x62   : > { %980 = shalt.err (!%p977_p4)
}
  0x63   : > { %s1116_s27 = smov 256   ;;  %s1117_s2 = smov 128  }
  0x64   : > { %s1118_s15 = smov 8   ;;  %p1778_p7 = scmp.ne.s32.totalorder %s1766_s8, 0 }
  0x65   : > { %809 = dma.hbm_to_vmem [thread:$0]  (!%p1777_p5), %s1282_s1, 384, %s1294_s7, %s1296_s25, %s1116_s27, %s1117_s2, %s1118_s15  }
  0x66   : > { %193 = sbr.rel (%p1778_p7) target bundleno = 599 (0x257), region = 32  ;;  %s195_s20 = sand.u32 (!%p1778_p7), 1, %s1087_s16  }
  0x67   : > { %s782_s5 = smul.u32 (!%p1778_p7), 24, %s195_s20  ;;  %s196_s11 = scalar_lea.sflag (!%p1778_p7), [#allocation5], %s195_s20 }
  0x68   : > { %p1779_p13 = scmp.ne.s32.totalorder (!%p1778_p7), %s1760_s29, 0 }
  0x69   : > { %s1327_s12 = scalar_lea.vmem (!%p1778_p7), [#allocation4], %s782_s5 }
  0x6d   : > { %1054 = dma.done.wait (%p1779_p13), %s196_s11, 384  }
  0x6e   : > { %1056 = vsyncadd (%p1779_p13), %s196_s11, 4294966912  ;;  %p1780_p2 = scmp.ne.s32.totalorder %s1758_s26, 0 }
  0x70   : > { %1058 = dma.done.wait (%p1780_p2), [#allocation7], 16  }
  0x71   : > { %1060 = vsyncadd (%p1780_p2), [#allocation7], 4294967280 }
  0x72   : > { %1062 = dma.done.wait (%p1780_p2), [#allocation10], 16  }
  0x73   : > { %1064 = vsyncadd (%p1780_p2), [#allocation10], 4294967280 }
  0x74   : > { %212 = sfence }
  0x75   : > { %s1732_s1 = sand.u32 1, %s1075_s13   ;;  %p721_p5 = scmp.ne.s32.totalorder %s1095_s18, 0 }
  0x76   : > { %s720_s8 = sshll.u32 %s1732_s1, 4  ;;  %vm235_vm0 = vcmask (!%p721_p5), 0   ;;  %v1119_v0 = vmov (!%p721_p5), inf   ;;  %v1120_v1 = vmov (!%p721_p5), -inf  }
  0x77   : > { %s1344_s29 = scalar_lea.vmem [#allocation11], %s720_s8  ;;  %234 = sbr.rel (%p721_p5) target bundleno = 126 (0x7e), region = 48  ;;  %236 = vst.msk [vmem:[#allocation2] sm:$0x1] (!%p721_p5), %vm235_vm0, %v1119_v0  ;;  %237 = vst.msk [vmem:[#allocation3] sm:$0x1] (!%p721_p5), %vm235_vm0, %v1120_v1 }
  0x7e PF: > { %s1348_s26 = sshll.u32 %s1099_s19, 4  ;;  %s1350_s23 = sld [smem:[#allocation9]]  ;;  %v1394_v2 = vld [vmem:[%s1327_s12] sm:$0xff]  ;;  %v1410_v4 = vld [vmem:[%s1327_s12 + $0x8] sm:$0xff]  ;;  %v1413_v5 = vld [vmem:[%s1327_s12 + $0x10] sm:$0xff]  ;;  %vm530_vm1 = vcmask 0  }
  0x7f   : > { %s1353_s7 = sld [smem:[#allocation8 + %s1348_s26]]  ;;  %s240_s25 = sadd.s32 1, %s1348_s26 }
  0x80   : > { %s242_s10 = sadd.s32 2, %s1348_s26  ;;  %s244_s6 = sadd.s32 3, %s1348_s26 }
  0x81   : > { %s246_s24 = sadd.s32 4, %s1348_s26  ;;  %s248_s27 = sadd.s32 5, %s1348_s26 }
  0x82   : > { %s1360_s2 = sld [smem:[#allocation8 + %s240_s25]]  ;;  %s250_s15 = sadd.s32 6, %s1348_s26 }
  0x83   : > { %s1363_s20 = sld [smem:[#allocation8 + %s242_s10]]  ;;  %s252_s0 = sadd.s32 7, %s1348_s26 }
  0x84   : > { %s1365_s5 = sld [smem:[#allocation8 + %s244_s6]]  ;;  %s254_s9 = sadd.s32 8, %s1348_s26  ;;  %v326_v3 = vstv %s1350_s23 }
  0x85   : > { %s1367_s11 = sld [smem:[#allocation8 + %s246_s24]]  ;;  %s256_s21 = sadd.s32 9, %s1348_s26  ;;  %v327_v6 = vmul.f32 %v326_v3, %v1394_v2  ;;  %v335_v7 = vstv %s1353_s7 }
  0x86   : > { %s1369_s8 = sld [smem:[#allocation8 + %s248_s27]]  ;;  %s258_s28 = sadd.s32 10, %s1348_s26 }
  0x87   : > { %s1371_s1 = sld [smem:[#allocation8 + %s250_s15]]  ;;  %s260_s17 = sadd.s32 11, %s1348_s26 }
  0x88   : > { %s1378_s25 = sld [smem:[#allocation8 + %s252_s0]]  ;;  %s262_s10 = sadd.s32 12, %s1348_s26  ;;  %v346_v8 = vstv %s1360_s2 }
  0x89   : > { %s1381_s6 = sld [smem:[#allocation8 + %s254_s9]]  ;;  %v358_v9 = vstv %s1363_s20  ;;  %p773_p8 = scmp.ne.s32.totalorder %s1095_s18, 1 }
  0x8a   : > { %s1383_s24 = sld [smem:[#allocation8 + %s256_s21]]  ;;  %v370_v10 = vstv %s1365_s5 }
  0x8b   : > { %s1385_s27 = sld [smem:[#allocation8 + %s258_s28]]  ;;  %v382_v11 = vstv %s1367_s11 }
  0x8c   : > { %s1387_s16 = sld [smem:[#allocation8 + %s260_s17]]  ;;  %v394_v12 = vstv %s1369_s8 }
  0x8d   : > { %s1389_s15 = sld [smem:[#allocation8 + %s262_s10]]  ;;  %v406_v13 = vstv %s1371_s1 }
  0x8e   : > { %s1391_s4 = sld [smem:[#allocation9 + $0x1]]  ;;  %s1397_s0 = sld [smem:[#allocation9 + $0x2]]  ;;  %v418_v14 = vstv %s1378_s25 }
  0x8f   : > { %s1399_s21 = sld [smem:[#allocation9 + $0x3]]  ;;  %s1401_s9 = sld [smem:[#allocation9 + $0x4]]  ;;  %v430_v15 = vstv %s1381_s6 }
  0x90   : > { %s1403_s17 = sld [smem:[#allocation9 + $0x5]]  ;;  %s1405_s28 = sld [smem:[#allocation9 + $0x6]]  ;;  %v442_v17 = vstv %s1383_s24 }
  0x91   : > { %s1407_s10 = sld [smem:[#allocation9 + $0x7]]  ;;  %s1417_s23 = sld [smem:[#allocation9 + $0x8]]  ;;  %v454_v18 = vstv %s1385_s27 }
  0x92   : > { %s1419_s14 = sld [smem:[#allocation9 + $0x9]]  ;;  %s1425_s22 = sld [smem:[#allocation9 + $0xa]]  ;;  %v466_v19 = vstv %s1387_s16 }
  0x93   : > { %s1427_s12 = sld [smem:[#allocation9 + $0xb]]  ;;  %s1433_s7 = sld [smem:[#allocation9 + $0xc]]  ;;  %v478_v23 = vstv %s1389_s15 }
  0x94   : > { %s1435_s3 = sld [smem:[#allocation9 + $0xd]]  ;;  %v328_v16 = vstv %s1391_s4  ;;  %s1441_s30 = sld [smem:[#allocation9 + $0xe]]  ;;  %v331_v21 = vstv %s1397_s0 }
  0x95   : > { %v329_v20 = vmul.f32 %v1410_v4, %v328_v16  ;;  %v337_v22 = vstv %s1399_s21  ;;  %s1447_s13 = sld [smem:[#allocation9 + $0xf]]  ;;  %s1449_s19 = sld [smem:[#allocation9 + $0x10]]  ;;  %v332_v24 = vmul.f32 %v1413_v5, %v331_v21  ;;  %v339_v26 = vstv %s1401_s9 }
  0x96   : > { %v338_v25 = vmul.f32 %v337_v22, %v1394_v2  ;;  %v342_v27 = vstv %s1403_s17  ;;  %v340_v29 = vmul.f32 %v1410_v4, %v339_v26  ;;  %v349_v31 = vstv %s1405_s28  ;;  %s1458_s4 = sld [smem:[#allocation9 + $0x11]]  ;;  %s1460_s0 = sld [smem:[#allocation9 + $0x12]] }
  0x97   : > { %v330_v28 = vadd.f32 %v329_v20, %v327_v6  ;;  %v343_v30 = vmul.f32 %v1413_v5, %v342_v27  ;;  %v350_v32 = vmul.f32 %v349_v31, %v1394_v2  ;;  %v351_v33 = vstv %s1407_s10  ;;  %s1468_s21 = sld [smem:[#allocation9 + $0x13]]  ;;  %s1474_s9 = sld [smem:[#allocation9 + $0x14]] }
  0x98   : > { %v354_v34 = vstv %s1417_s23  ;;  %v361_v35 = vstv %s1419_s14  ;;  %v341_v37 = vadd.f32 %v340_v29, %v338_v25  ;;  %v352_v38 = vmul.f32 %v1410_v4, %v351_v33  ;;  %s1477_s14 = sld [smem:[#allocation9 + $0x15]]  ;;  %s1485_s17 = sld [smem:[#allocation9 + $0x17]] }
  0x99   : > { %v333_v36 = vadd.f32 %v332_v24, %v330_v28  ;;  %v355_v39 = vmul.f32 %v1413_v5, %v354_v34  ;;  %v362_v40 = vmul.f32 %v361_v35, %v1394_v2  ;;  %v363_v41 = vstv %s1425_s22  ;;  %s1483_s22 = sld [smem:[#allocation9 + $0x16]]  ;;  %s1491_s28 = sld [smem:[#allocation9 + $0x18]] }
  0x9a   : > { %v366_v42 = vstv %s1427_s12  ;;  %v373_v43 = vstv %s1433_s7  ;;  %v344_v45 = vadd.f32 %v343_v30, %v341_v37  ;;  %v353_v46 = vadd.f32 %v352_v38, %v350_v32  ;;  %s1512_s2 = sld [smem:[#allocation9 + $0x1d]]  ;;  %s1518_s20 = sld [smem:[#allocation9 + $0x1e]] }
  0x9b   : > { %v334_v44 = vmax.f32 %v333_v36, 0.0  ;;  %v364_v47 = vmul.f32 %v1410_v4, %v363_v41  ;;  %v367_v48 = vmul.f32 %v1413_v5, %v366_v42  ;;  %v374_v49 = vmul.f32 %v373_v43, %v1394_v2  ;;  %s1522_s10 = sld [smem:[#allocation9 + $0x1f]]  ;;  %s1526_s5 = sld [smem:[#allocation9 + $0x20]] }
  0x9c   : > { %v375_v50 = vstv %s1435_s3  ;;  %v378_v51 = vstv %s1441_s30  ;;  %v345_v53 = vmax.f32 %v344_v45, 0.0  ;;  %v356_v54 = vadd.f32 %v355_v39, %v353_v46  ;;  %s1493_s3 = sld [smem:[#allocation9 + $0x19]]  ;;  %s1510_s30 = sld [smem:[#allocation9 + $0x1c]] }
  0x9d   : > { %v336_v52 = vmul.f32 %v335_v7, %v334_v44  ;;  %v365_v55 = vadd.f32 %v364_v47, %v362_v40  ;;  %v376_v56 = vmul.f32 %v1410_v4, %v375_v50  ;;  %v379_v57 = vmul.f32 %v1413_v5, %v378_v51  ;;  %s1532_s23 = sld [smem:[#allocation9 + $0x21]]  ;;  %s1534_s12 = sld [smem:[#allocation9 + $0x22]] }
  0x9e   : > { %v385_v58 = vstv %s1447_s13  ;;  %v387_v59 = vstv %s1449_s19  ;;  %v347_v60 = vmul.f32 %v346_v8, %v345_v53  ;;  %v357_v61 = vmax.f32 %v356_v54, 0.0  ;;  %s1501_s13 = sld [smem:[#allocation9 + $0x1a]]  ;;  %s1503_s19 = sld [smem:[#allocation9 + $0x1b]] }
  0x9f   : > { %v368_v62 = vadd.f32 %v367_v48, %v365_v55  ;;  %v386_v63 = vmul.f32 %v385_v58, %v1394_v2  ;;  %v377_v0 = vadd.f32 %v376_v56, %v374_v49  ;;  %v388_v1 = vmul.f32 %v1410_v4, %v387_v59  ;;  %s1542_s11 = sld [smem:[#allocation9 + $0x23]]  ;;  %s1544_s7 = sld [smem:[#allocation9 + $0x24]] }
  0xa0   : > { %v390_v3 = vstv %s1458_s4  ;;  %v397_v6 = vstv %s1460_s0  ;;  %v348_v7 = vadd.f32 %v347_v60, %v336_v52  ;;  %v359_v16 = vmul.f32 %v358_v9, %v357_v61  ;;  %s1551_s8 = sld [smem:[#allocation9 + $0x25]]  ;;  %s1553_s4 = sld [smem:[#allocation9 + $0x26]] }
  0xa1   : > { %v369_v8 = vmax.f32 %v368_v62, 0.0  ;;  %v391_v20 = vmul.f32 %v1413_v5, %v390_v3  ;;  %v380_v21 = vadd.f32 %v379_v57, %v377_v0  ;;  %v389_v22 = vadd.f32 %v388_v1, %v386_v63  ;;  %s1559_s0 = sld [smem:[#allocation9 + $0x27]]  ;;  %s1574_s1 = sld [smem:[#allocation9 + $0x2a]] }
  0xa2   : > { %v398_v24 = vmul.f32 %v397_v6, %v1394_v2  ;;  %v399_v25 = vstv %s1468_s21  ;;  %v360_v26 = vadd.f32 %v359_v16, %v348_v7  ;;  %v402_v28 = vstv %s1474_s9  ;;  %s1564_s21 = sld [smem:[#allocation9 + $0x28]]  ;;  %s1566_s9 = sld [smem:[#allocation9 + $0x29]] }
  0xa3   : > { %v371_v27 = vmul.f32 %v370_v10, %v369_v8  ;;  %v400_v9 = vmul.f32 %v1410_v4, %v399_v25  ;;  %v381_v29 = vmax.f32 %v380_v21, 0.0  ;;  %v392_v30 = vadd.f32 %v391_v20, %v389_v22  ;;  %s264_s25 = sadd.s32 13, %s1348_s26  ;;  %s266_s6 = sadd.s32 14, %s1348_s26 }
  0xa4   : > { %v403_v31 = vmul.f32 %v1413_v5, %v402_v28  ;;  %v409_v32 = vstv %s1477_s14  ;;  %v411_v35 = vstv %s1483_s22  ;;  %v414_v39 = vstv %s1485_s17  ;;  %s1579_s14 = sld [smem:[#allocation9 + $0x2b]]  ;;  %s1583_s22 = sld [smem:[#allocation9 + $0x2c]] }
  0xa5   : > { %v372_v33 = vadd.f32 %v371_v27, %v360_v26  ;;  %v401_v34 = vadd.f32 %v400_v9, %v398_v24  ;;  %v410_v10 = vmul.f32 %v409_v32, %v1394_v2  ;;  %v383_v36 = vmul.f32 %v382_v11, %v381_v29  ;;  %s1590_s17 = sld [smem:[#allocation9 + $0x2d]]  ;;  %s770_s16 = sshll.u32 %s1095_s18, 3 }
  0xa6   : > { %v393_v37 = vmax.f32 %v392_v30, 0.0  ;;  %v412_v38 = vmul.f32 %v1410_v4, %v411_v35  ;;  %v415_v41 = vmul.f32 %v1413_v5, %v414_v39  ;;  %v421_v42 = vstv %s1491_s28  ;;  %s1592_s28 = sld [smem:[#allocation9 + $0x2e]]  ;;  %s546_s24 = scalar_lea.vmem %s1344_s29, %s770_s16 [#allocation11] }
  0xa7   : > { %v404_v40 = vadd.f32 %v403_v31, %v401_v34  ;;  %v423_v43 = vstv %s1493_s3  ;;  %v384_v44 = vadd.f32 %v383_v36, %v372_v33  ;;  %v422_v46 = vmul.f32 %v421_v42, %v1394_v2  ;;  %s1599_s3 = sld [smem:[#allocation8 + %s264_s25]] }
  0xa8   : > { %v395_v45 = vmul.f32 %v394_v12, %v393_v37  ;;  %v413_v11 = vadd.f32 %v412_v38, %v410_v10  ;;  %v424_v48 = vmul.f32 %v1410_v4, %v423_v43  ;;  %v426_v49 = vstv %s1501_s13  ;;  %s1601_s13 = sld [smem:[#allocation9 + $0x2f]] }
  0xa9   : > { %v405_v47 = vmax.f32 %v404_v40, 0.0  ;;  %v433_v50 = vstv %s1503_s19  ;;  %v427_v53 = vmul.f32 %v1413_v5, %v426_v49  ;;  %v435_v56 = vstv %s1510_s30  ;;  %s1610_s19 = sld [smem:[#allocation8 + %s266_s6]]  ;;  %s268_s30 = sadd.s32 15, %s1348_s26 }
  0xaa   : > { %v396_v51 = vadd.f32 %v395_v45, %v384_v44  ;;  %v416_v52 = vadd.f32 %v415_v41, %v413_v11  ;;  %v434_v12 = vmul.f32 %v433_v50, %v1394_v2  ;;  %v425_v55 = vadd.f32 %v424_v48, %v422_v46  ;;  %s1621_s26 = sld [smem:[#allocation8 + %s268_s30]] }
  0xab   : > { %v407_v54 = vmul.f32 %v406_v13, %v405_v47  ;;  %v438_v57 = vstv %s1512_s2  ;;  %v436_v59 = vmul.f32 %v1410_v4, %v435_v56  ;;  %v445_v61 = vstv %s1518_s20 }
  0xac   : > { %v417_v58 = vmax.f32 %v416_v52, 0.0  ;;  %v439_v60 = vmul.f32 %v1413_v5, %v438_v57  ;;  %v428_v13 = vadd.f32 %v427_v53, %v425_v55  ;;  %v446_v63 = vmul.f32 %v445_v61, %v1394_v2 }
  0xad   : > { %v408_v62 = vadd.f32 %v407_v54, %v396_v51  ;;  %v447_v0 = vstv %s1522_s10  ;;  %v437_v3 = vadd.f32 %v436_v59, %v434_v12  ;;  %v450_v7 = vstv %s1526_s5 }
  0xae   : > { %v419_v1 = vmul.f32 %v418_v14, %v417_v58  ;;  %v448_v6 = vmul.f32 %v1410_v4, %v447_v0  ;;  %v429_v16 = vmax.f32 %v428_v13, 0.0  ;;  %v451_v8 = vmul.f32 %v1413_v5, %v450_v7 }
  0xaf   : > { %v457_v20 = vstv %s1532_s23  ;;  %v459_v21 = vstv %s1534_s12  ;;  %v440_v24 = vadd.f32 %v439_v60, %v437_v3  ;;  %v462_v9 = vstv %s1542_s11 }
  0xb0   : > { %v420_v22 = vadd.f32 %v419_v1, %v408_v62  ;;  %v449_v14 = vadd.f32 %v448_v6, %v446_v63  ;;  %v458_v25 = vmul.f32 %v457_v20, %v1394_v2  ;;  %v431_v26 = vmul.f32 %v430_v15, %v429_v16 }
  0xb1   : > { %v460_v27 = vmul.f32 %v1410_v4, %v459_v21  ;;  %v469_v28 = vstv %s1544_s7  ;;  %v441_v29 = vmax.f32 %v440_v24, 0.0  ;;  %v463_v31 = vmul.f32 %v1413_v5, %v462_v9 }
  0xb2   : > { %v452_v30 = vadd.f32 %v451_v8, %v449_v14  ;;  %v470_v32 = vmul.f32 %v469_v28, %v1394_v2  ;;  %v432_v15 = vadd.f32 %v431_v26, %v420_v22  ;;  %v471_v34 = vstv %s1551_s8 }
  0xb3   : > { %v461_v33 = vadd.f32 %v460_v27, %v458_v25  ;;  %v474_v10 = vstv %s1553_s4  ;;  %v443_v35 = vmul.f32 %v442_v17, %v441_v29  ;;  %v472_v37 = vmul.f32 %v1410_v4, %v471_v34 }
  0xb4   : > { %v453_v36 = vmax.f32 %v452_v30, 0.0  ;;  %v475_v38 = vmul.f32 %v1413_v5, %v474_v10  ;;  %v481_v40 = vstv %s1559_s0  ;;  %v483_v41 = vstv %s1564_s21 }
  0xb5   : > { %v464_v39 = vadd.f32 %v463_v31, %v461_v33  ;;  %v486_v42 = vstv %s1566_s9  ;;  %v444_v43 = vadd.f32 %v443_v35, %v432_v15  ;;  %v473_v17 = vadd.f32 %v472_v37, %v470_v32 }
  0xb6   : > { %v455_v44 = vmul.f32 %v454_v18, %v453_v36  ;;  %v482_v45 = vmul.f32 %v481_v40, %v1394_v2  ;;  %v484_v46 = vmul.f32 %v1410_v4, %v483_v41  ;;  %v487_v47 = vmul.f32 %v1413_v5, %v486_v42  ;;  %v532_v41 = vld [vmem:[#allocation3] sm:$0x1] }
  0xb7   : > { %v465_v11 = vmax.f32 %v464_v39, 0.0  ;;  %v493_v48 = vstv %s1574_s1  ;;  %v476_v50 = vadd.f32 %v475_v38, %v473_v17  ;;  %v495_v52 = vstv %s1579_s14  ;;  %v518_v38 = vld [vmem:[#allocation2] sm:$0x1] }
  0xb8   : > { %v456_v49 = vadd.f32 %v455_v44, %v444_v43  ;;  %v494_v51 = vmul.f32 %v493_v48, %v1394_v2  ;;  %v485_v53 = vadd.f32 %v484_v46, %v482_v45  ;;  %v496_v12 = vmul.f32 %v1410_v4, %v495_v52 }
  0xb9   : > { %v467_v18 = vmul.f32 %v466_v19, %v465_v11  ;;  %v498_v54 = vstv %s1583_s22  ;;  %v477_v55 = vmax.f32 %v476_v50, 0.0  ;;  %v505_v57 = vstv %s1590_s17 }
  0xba   : > { %v499_v56 = vmul.f32 %v1413_v5, %v498_v54  ;;  %v507_v58 = vstv %s1592_s28  ;;  %v488_v60 = vadd.f32 %v487_v47, %v485_v53  ;;  %v497_v61 = vadd.f32 %v496_v12, %v494_v51 }
  0xbb   : > { %v468_v59 = vadd.f32 %v467_v18, %v456_v49  ;;  %v506_v62 = vmul.f32 %v505_v57, %v1394_v2  ;;  %v479_v13 = vmul.f32 %v478_v23, %v477_v55  ;;  %v490_v63 = vstv %s1599_s3 }
  0xbc   : > { %v508_v19 = vmul.f32 %v1410_v4, %v507_v58  ;;  %v510_v0 = vstv %s1601_s13  ;;  %v489_v1 = vmax.f32 %v488_v60, 0.0  ;;  %v500_v3 = vadd.f32 %v499_v56, %v497_v61 }
  0xbd   : > { %v511_v6 = vmul.f32 %v1413_v5, %v510_v0  ;;  %v480_v7 = vadd.f32 %v479_v13, %v468_v59  ;;  %v502_v16 = vstv %s1610_s19  ;;  %v514_v14 = vstv %s1621_s26 }
  0xbe   : > { %v509_v8 = vadd.f32 %v508_v19, %v506_v62  ;;  %v491_v20 = vmul.f32 %v490_v63, %v489_v1  ;;  %v501_v21 = vmax.f32 %v500_v3, 0.0  ;;  %v561_v45 = vlaneseq (!%p773_p8) }
  0xbf   : > { %v1121_v11 = vmov (!%p773_p8), 0  }
  0xc0   : > { %v512_v22 = vadd.f32 %v511_v6, %v509_v8  ;;  %v492_v2 = vadd.f32 %v491_v20, %v480_v7  ;;  %v503_v24 = vmul.f32 %v502_v16, %v501_v21  ;;  %918 = vset.pattern.permute.xlu0 (!%p773_p8), %v1121_v11  ;;  %v562_v47 = vshrl.u32 (!%p773_p8), %v561_v45, 7 }
  0xc2   : > { %v513_v23 = vmax.f32 %v512_v22, 0.0  ;;  %v504_v25 = vadd.f32 %v503_v24, %v492_v2  ;;  %v563_v49 = vsub.s32 (!%p773_p8), 0, %v562_v47 }
  0xc4   : > { %v515_v4 = vmul.f32 %v514_v14, %v513_v23 }
  0xc6   : > { %v516_v26 = vadd.f32 %v515_v4, %v504_v25 }
  0xc8   : > { %v517_v27 = vmax.f32 %v516_v26, 0.0 }
  0xca   : > { %519 = vmin.xlane.f32.xlu0 %v517_v27  ;;  %547 = vst [vmem:[%s546_s24] sm:$0xff] %v517_v27 }
  0xce   : > { %533 = vmax.xlane.f32.xlu0 %v517_v27 }
  0xd1   : > { %v558_v53 = vld [vmem:[%s1344_s29] sm:$0xff] (!%p773_p8)  ;;  %v559_v12 = vld [vmem:[%s1344_s29 + $0x8] sm:$0xff] (!%p773_p8) }
 0x157   : > { %v520_v5 = vpop.xlane.xlu0 %519 }
 0x158   : > { %v521_v9 = vrot.slane %v520_v5, 4 }
 0x15a   : > { %v522_v28 = vmin.f32 %v520_v5, %v521_v9 }
 0x15b   : > { %v534_v29 = vpop.xlane.xlu0 %533 }
 0x15c   : > { %v523_v30 = vrot.slane %v522_v28, 2  ;;  %v535_v31 = vrot.slane %v534_v29, 4 }
 0x15e   : > { %v536_v32 = vmax.f32 %v534_v29, %v535_v31  ;;  %v524_v15 = vmin.f32 %v522_v28, %v523_v30 }
 0x160   : > { %v537_v33 = vrot.slane %v536_v32, 2  ;;  %v525_v34 = vrot.slane %v524_v15, 1 }
 0x162   : > { %v538_v10 = vmax.f32 %v536_v32, %v537_v33  ;;  %v526_v35 = vmin.f32 %v524_v15, %v525_v34 }
 0x164   : > { %783 = vpush %v526_v35  ;;  %v539_v36 = vrot.slane %v538_v10, 1 }
 0x166   : > { %v540_v37 = vmax.f32 %v538_v10, %v539_v36 }
 0x168   : > { %785 = vpush %v540_v37 }
 0x195   : > { %s784_s27 = spop %783 }
 0x196   : > { %v528_v39 = vstv %s784_s27 }
 0x197   : > { %v529_v40 = vmin.f32 %v518_v38, %v528_v39  ;;  %551 = sbr.rel (%p773_p8) target bundleno = 569 (0x239), region = 52 }
 0x199   : > { %531 = vst.msk [vmem:[#allocation2] sm:$0x1] %vm530_vm1, %v529_v40  ;;  %s786_s15 = spop %785 }
 0x19a   : > { %v542_v42 = vstv %s786_s15 }
 0x19b   : > { %v543_v43 = vmax.f32 %v532_v41, %v542_v42 }
 0x19d   : > { %544 = vst.msk [vmem:[#allocation3] sm:$0x1] %vm530_vm1, %v543_v43 }
 0x1a0   : > { %v552_v44 = vld [vmem:[#allocation2] sm:$0x1] }
 0x1a1   : > { %v564_v50 = vrot.slane %v552_v44, %v563_v49 }
 0x1a3   : > { %566 = vperm.xlu0 %918, %v564_v50  }
 0x1a4   : > { %v553_v17 = vld [vmem:[#allocation3] sm:$0x1] }
 0x1a5   : > { %v554_v46 = vsub.f32 %v553_v17, %v552_v44 }
 0x1a7   : > { %v555_v48 = vadd.f32 1e-06, %v554_v46 }
 0x1a9   : > { %919 = vrcp.f32 %v555_v48 }
 0x1b3   : > { %v920_v51 = vpop.eup %919 }
 0x1b4   : > { %v575_v52 = vrot.slane %v920_v51, %v563_v49 }
 0x1b6   : > { %577 = vperm.xlu0 %918, %v575_v52  }
 0x222   : > { %v567_v18 = vpop.permute.xlu0 %566 }
 0x223   : > { %v569_v54 = vsub.f32 %v558_v53, %v567_v18  ;;  %v570_v55 = vsub.f32 %v559_v12, %v567_v18 }
 0x235   : > { %v578_v56 = vpop.permute.xlu0 %577 }
 0x236   : > { %v580_v57 = vmul.f32 %v578_v56, %v569_v54  ;;  %v581_v58 = vmul.f32 %v578_v56, %v570_v55 }
 0x238   : > { %582 = vst [vmem:[%s1344_s29] sm:$0xff] %v580_v57  ;;  %583 = vst [vmem:[%s1344_s29 + $0x8] sm:$0xff] %v581_v58 }
 0x239 PF: > { %s1781_s18 = sld [smem:[#allocation21_spill]]  ;;  %s1782_s2 = sld [smem:[#allocation17_spill]] }
 0x23a   : > { %s1783_s20 = sld [smem:[#allocation25_spill]]  ;;  %s1784_s12 = sld [smem:[#allocation34_spill]] }
 0x23b   : > { %s598_s8 = sshll.u32 %s1344_s29, 4  ;;  %s1122_s9 = smov [#allocation11]   ;;  %s1653_s8 = int_to_ptr.vmem [resolvable:$true] %s598_s8 }
 0x23c   : > { %s981_s21 = scalar_lea.vmem %s1653_s8, 256  ;;  %s985_s1 = sshll.u32 %s1122_s9, 4  ;;  %s986_s1 = int_to_ptr.vmem [resolvable:$false] %s985_s1 }
 0x23d   : > { %p982_p11 = scmp.ne.s32.totalorder %s1653_s8, %s981_s21  ;;  %s987_s14 = scalar_lea.vmem %s986_s1, 512 }
 0x23e   : > { %p988_p12 = scmp.lt.s32.totalorder %s1653_s8, %s986_s1  ;;  %p989_p0 = scmp.lt.s32.totalorder %s987_s14, %s981_s21 }
 0x23f   : > { %s779_s10 = sshll.u32 %s1781_s18, 8  ;;  %s1786_s4 = sand.u32 1, %s1782_s2  }
 0x240   : > { %s1785_s11 = smov %s1784_s12  ;;  %s1650_s7 = scalar_lea.hbm %s1784_s12, %s779_s10 }
 0x241   : > { %s1657_s0 = scalar_lea.sflag [#allocation6], %s1786_s4  ;;  %p1787_p6 = scmp.ne.s32.totalorder %s1783_s20, 0 }
 0x242   : > { %p990_p9 = por %p989_p0, %p988_p12 }
 0x243   : > { %p983_p3 = pnand %p982_p11, %p1787_p6 }
 0x245   : > { %p984_p10 = pneg %p983_p3 }
 0x247   : > { %p991_p1 = pnand %p990_p9, %p984_p10 }
 0x249   : > { %994 = shalt.err (!%p991_p1)
}
 0x24a   : > { %s995_s29 = scalar_lea.hbm %s1650_s7, 256  ;;  %s999_s17 = scalar_lea.hbm %s1785_s11, 512 }
 0x24b   : > { %p996_p4 = scmp.ne.s32.totalorder %s1650_s7, %s995_s29  ;;  %p1000_p2 = scmp.lt.u32.totalorder %s1650_s7, %s1785_s11 }
 0x24c   : > { %p1001_p5 = scmp.lt.u32.totalorder %s999_s17, %s995_s29  ;;  %p1003_p11 = scmp.lt.u32.totalorder %s995_s29, %s1650_s7 }
 0x24d   : > { %p997_p7 = pnand %p996_p4, %p1787_p6 }
 0x24e   : > { %p1002_p8 = por %p1001_p5, %p1000_p2 }
 0x24f   : > { %p998_p13 = pneg %p997_p7 }
 0x250   : > { %p1004_p3 = por %p1003_p11, %p1002_p8 }
 0x252   : > { %p1005_p10 = pnand %p1004_p3, %p998_p13 }
 0x254   : > { %1008 = shalt.err (!%p1005_p10)
}
 0x255   : > { %s1123_s3 = smov 128   ;;  %s1124_s13 = smov 8  }
 0x256   : > { %797 = dma.vmem_to_hbm [thread:$0]  (%p1787_p6), %s1653_s8, 256, %s1650_s7, %s1657_s0, %s1123_s3, %s1123_s3, %s1124_s13  }
 0x257 PF: > { %s1788_s19 = sld [smem:[#allocation24_spill]]  ;;  %s1789_s30 = sld [smem:[#allocation16_spill]] }
 0x258   : > { %s1790_s26 = sld [smem:[#allocation26_spill]] }
 0x25d   : > { %p819_p12 = scmp.ge.s32.totalorder %s1788_s19, 2  ;;  %s613_s16 = sand.u32 1, %s1789_s30  }
 0x25e   : > { %p1791_p0 = scmp.ne.s32.totalorder %s1790_s26, 0  ;;  %s614_s24 = scalar_lea.sflag [#allocation6], %s613_s16 }
 0x260   : > { %p811_p9 = pnand %p819_p12, %p1791_p0 }
 0x262   : > { %1066 = dma.done.wait (!%p811_p9), %s614_s24, 256  }
 0x263   : > { %1068 = vsyncadd (!%p811_p9), %s614_s24, 4294967040  ;;  %s21_s22 = sadd.s32 1, %s1788_s19   ;;  %s1792_s12 = sld [smem:[#allocation17_spill]] }
 0x264   : > { %p18_p1 = scmp.ge.s32.totalorder %s21_s22, 6   ;;  %s1793_s13 = sld [smem:[#allocation18_spill]] }
 0x265   : > { %s1794_s14 = sld [smem:[#allocation29_spill]]  ;;  %s1795_s15 = sld [smem:[#allocation19_spill]] }
 0x266   : > { %s1796_s16 = sld [smem:[#allocation20_spill]]  ;;  %s1797_s17 = sld [smem:[#allocation30_spill]] }
 0x267   : > { %s1798_s18 = sld [smem:[#allocation22_spill]]  ;;  %s1799_s19 = sld [smem:[#allocation23_spill]] }
 0x268   : > { %s1800_s20 = sld [smem:[#allocation27_spill]]  ;;  %s1801_s21 = sld [smem:[#allocation28_spill]] }
 0x269   :  { %20 = sbr.rel (!%p18_p1) target bundleno = 16 (0x10), region = 97 }
 0x270   :  { %619 = vsyncpa [#allocation5], 1 }
 0x271   :  { %621 = vsyncpa [#allocation5 + $0x1], 1 }
 0x272   :  { %622 = vsyncpa [#allocation6], 1 }
 0x273   :  { %624 = vsyncpa [#allocation6 + $0x1], 1 }
 0x274   :  { %625 = vsyncpa [#allocation7], 1 }
 0x275   :  { %627 = vsyncpa [#allocation7 + $0x1], 1 }
 0x276   :  { %628 = vsyncpa [#allocation10], 1 }

</bundles_post_ra>
